<compile_context>
chip_gen: v7x
topology: tpu7x:2x2x1
jax: 0.10.0
libtpu: 0.0.40
codegen_flags: <defaults>
</compile_context>

<pallas_src>
import numpy as np
import jax
import jax.numpy as jnp
from jax.experimental import pallas as pl
from jax.experimental.pallas import tpu as pltpu

# ---- problem sizes (small, consistent with the module) ----------------------
B, CIN, H, W = 2, 2, 4, 4          # example NCHW input (B, 2, H, W)
C1, C2, C3 = 20, 20, 1             # conv channel sizes from the module
ACTIONS = H * W                    # Flatten(B,1,H,W) -> Linear(actions, actions)
assert H * W == ACTIONS

PH, PW = H + 2, W + 2              # zero-ring padded image
PHW = PH * PW                      # 36 padded pixels per state
SP = 128                           # lane width of a vreg
S_PER_TILE = SP // PHW             # 3 states packed per 128-lane vector
assert S_PER_TILE * PHW <= SP

CIN_PAD, C_PAD, C3_PAD = 8, 24, 8  # sublane-aligned channel padding

# flat lane shift of tap (dy, dx) of the 3x3 kernel
SHIFTS = tuple((dy - 1) * PW + (dx - 1) for dy in range(3) for dx in range(3))

# ---- merged parameter buffer layout: rows of a (PROWS, 128) f32 buffer -------
W1_R0, W1_R1 = 0, 9 * C_PAD                     # (216,  8) stacked conv1 weight
W2_R0, W2_R1 = W1_R1, W1_R1 + 9 * C_PAD         # (216, 24) stacked conv2 weight
W3_R0, W3_R1 = W2_R1, W2_R1 + 9 * C3_PAD        # ( 72, 24) stacked conv3 weight
B1_R0, B1_R1 = W3_R1, W3_R1 + C_PAD             # ( 24,  1) conv1 bias (column)
B2_R0, B2_R1 = B1_R1, B1_R1 + C_PAD             # ( 24,  1) conv2 bias
B3_R0, B3_R1 = B2_R1, B2_R1 + C3_PAD            # (  8,  1) conv3 bias
WL_R0, WL_R1 = B3_R1, B3_R1 + PHW               # ( 36, 16) head weight (pad rows = 0)
BL_R0 = ((WL_R1 + 7) // 8) * 8                  # 8-aligned start for the head bias
BL_R1 = BL_R0 + 1                               # (  1, 16) head bias
PROWS = ((BL_R1 + 7) // 8) * 8                  # 608


# ---------------------------------------------------------------------------
# Kernel: 3x (stacked matmul + 9 lane-rolls + ReLU) + fused Linear/Softmax head.
# Processes S_PER_TILE states per grid step.
# ---------------------------------------------------------------------------
def forward_kernel(x_ref, p_ref, out_ref):
    # Interior-lane mask, built in-kernel (comparisons + adds only, no int div).
    lane = jax.lax.broadcasted_iota(jnp.int32, (1, SP), 1)
    img = jnp.zeros((1, SP), jnp.int32)
    for k in range(1, (SP - 1) // PHW + 1):
        img = img + (lane >= k * PHW).astype(jnp.int32)
    pos = lane - img * PHW
    row = jnp.zeros((1, SP), jnp.int32)
    for k in range(1, (PHW - 1) // PW + 1):
        row = row + (pos >= k * PW).astype(jnp.int32)
    col = pos - row * PW
    interior = ((img < S_PER_TILE) & (row >= 1) & (row <= H)
                & (col >= 1) & (col <= W))
    mask = interior.astype(jnp.float32)                          # (1, SP)

    def conv_relu(act, w_r0, w_r1, cin_pad, cout_pad, b_r0, b_r1, apply_mask):
        # act: (cin_pad, SP).  One stacked MXU matmul, then roll-after-matmul:
        # lane rolls commute with the sublane contraction.
        w = p_ref[w_r0:w_r1, 0:cin_pad]                          # (9*cout_pad, cin_pad)
        b = p_ref[b_r0:b_r1, 0:1]                                # (cout_pad, 1)
        y = jnp.dot(w, act, preferred_element_type=jnp.float32)  # (9*cout_pad, SP)
        acc = None
        for t, sft in enumerate(SHIFTS):
            blk = y[t * cout_pad:(t + 1) * cout_pad, :]          # aligned sublane block
            if sft != 0:
                blk = pltpu.roll(blk, shift=(-sft) % SP, axis=1)  # XLU lane rotate
            acc = blk if acc is None else acc + blk
        out = jnp.maximum(acc + b, 0.0)                          # bias + ReLU
        return out * mask if apply_mask else out                 # re-zero pad ring

    a0 = x_ref[0]                                                # (CIN_PAD, SP)
    a1 = conv_relu(a0, W1_R0, W1_R1, CIN_PAD, C_PAD, B1_R0, B1_R1, True)
    a2 = conv_relu(a1, W2_R0, W2_R1, C_PAD, C_PAD, B2_R0, B2_R1, True)
    # conv3 feeds only the head, whose weight rows at pad positions are zero,
    # so the interior re-mask is redundant here (invariant kept in prepare_params).
    a3 = conv_relu(a2, W3_R0, W3_R1, C_PAD, C3_PAD, B3_R0, B3_R1, False)

    # Fused Flatten + Linear + Softmax for the S_PER_TILE states of this tile.
    wl = p_ref[WL_R0:WL_R1, 0:ACTIONS]                           # (PHW, ACTIONS)
    bl = p_ref[BL_R0:BL_R1, 0:ACTIONS]                           # (1, ACTIONS)
    r3 = a3[0:1, :]                                              # (1, SP) conv3 channel 0
    feat = jnp.concatenate(
        [r3[:, s * PHW:(s + 1) * PHW] for s in range(S_PER_TILE)], axis=0)  # (S, PHW)
    logits = jnp.dot(feat, wl, preferred_element_type=jnp.float32) + bl     # (S, ACTIONS)
    mx = jnp.max(logits, axis=1, keepdims=True)
    e = jnp.exp(logits - mx)
    probs = e * pl.reciprocal(jnp.sum(e, axis=1, keepdims=True), approx=False)

    # Assemble one dense (8, 128) tile so the store is an unmasked vst / dense DMA.
    full = jnp.concatenate(
        [jnp.concatenate(
            [probs, jnp.zeros((S_PER_TILE, SP - ACTIONS), jnp.float32)], axis=1),
         jnp.zeros((8 - S_PER_TILE, SP), jnp.float32)], axis=0)
    out_ref[0] = full


# ---------------------------------------------------------------------------
# One-time static packing (hoisted off the per-call path).
# ---------------------------------------------------------------------------
_POS = np.array([(h + 1) * PW + (w + 1) for h in range(H) for w in range(W)], np.int32)


def _stack_conv_weight(w_hwio, cin_pad, cout_pad):
    # (3,3,cin,cout) HWIO -> (9*cout_pad, cin_pad), row index = t*cout_pad + co.
    kh, kw, cin, cout = w_hwio.shape
    wt = np.transpose(np.asarray(w_hwio, np.float32), (0, 1, 3, 2)).reshape(kh * kw, cout, cin)
    ws = np.zeros((kh * kw, cout_pad, cin_pad), np.float32)
    ws[:, :cout, :cin] = wt
    return ws.reshape(kh * kw * cout_pad, cin_pad)


def prepare_params(params):
    """Pack all static parameters into a single merged (PROWS, 128) VMEM buffer."""
    w1, b1, w2, b2, w3, b3, wl, bl = params
    buf = np.zeros((PROWS, SP), np.float32)
    buf[W1_R0:W1_R1, :CIN_PAD] = _stack_conv_weight(w1, CIN_PAD, C_PAD)
    buf[W2_R0:W2_R1, :C_PAD] = _stack_conv_weight(w2, C_PAD, C_PAD)
    buf[W3_R0:W3_R1, :C_PAD] = _stack_conv_weight(w3, C_PAD, C3_PAD)
    buf[B1_R0:B1_R0 + C1, 0] = np.asarray(b1, np.float32)
    buf[B2_R0:B2_R0 + C2, 0] = np.asarray(b2, np.float32)
    buf[B3_R0:B3_R0 + C3, 0] = np.asarray(b3, np.float32)
    # Torch Linear: logits = feat @ wl.T + bl.  Embed wl.T rows at padded spatial
    # positions; pad rows stay zero (this is what makes the post-conv3 mask unneeded).
    wlp = np.zeros((PHW, ACTIONS), np.float32)
    wlp[_POS, :] = np.asarray(wl, np.float32).T
    buf[WL_R0:WL_R1, :ACTIONS] = wlp
    buf[BL_R0, :ACTIONS] = np.asarray(bl, np.float32)
    return jnp.asarray(buf)


# ---------------------------------------------------------------------------
# Per-call wrapper (jit'ed): only input packing + pallas_call + output slice.
# ---------------------------------------------------------------------------
@jax.jit
def on_policy_forward(x_nchw, params_buf):
    """x_nchw: (B, 2, H, W) float32 -> (B, actions) softmax probabilities."""
    bsz = x_nchw.shape[0]
    n_tiles = (bsz + S_PER_TILE - 1) // S_PER_TILE
    b_pad = n_tiles * S_PER_TILE

    # Zero spatial ring + zero channel padding; 3 states per 128-lane vector.
    xp = jnp.zeros((b_pad, CIN_PAD, PH, PW), jnp.float32)
    xp = xp.at[:bsz, :CIN, 1:H + 1, 1:W + 1].set(x_nchw.astype(jnp.float32))
    xp = xp.reshape(n_tiles, S_PER_TILE, CIN_PAD, PHW)
    xp = jnp.transpose(xp, (0, 2, 1, 3)).reshape(n_tiles, CIN_PAD, S_PER_TILE * PHW)
    x_tiles = jnp.zeros((n_tiles, CIN_PAD, SP), jnp.float32)
    x_tiles = x_tiles.at[:, :, :S_PER_TILE * PHW].set(xp)

    out = pl.pallas_call(
        forward_kernel,
        out_shape=jax.ShapeDtypeStruct((n_tiles, 8, SP), jnp.float32),
        grid=(n_tiles,),
        in_specs=[
            pl.BlockSpec((1, CIN_PAD, SP), lambda i: (i, 0, 0)),   # per-tile states
            pl.BlockSpec((PROWS, SP), lambda i: (0, 0)),           # merged params (resident)
        ],
        out_specs=pl.BlockSpec((1, 8, SP), lambda i: (i, 0, 0)),
        compiler_params=pltpu.CompilerParams(
            dimension_semantics=("parallel",)),                    # 2 TCs on v7x
    )(x_tiles, params_buf)

    return out[:, :S_PER_TILE, :ACTIONS].reshape(b_pad, ACTIONS)[:bsz]


# ---------------------------------------------------------------------------
# Pure-JAX reference (mirrors the PyTorch module) for validation.
# ---------------------------------------------------------------------------
def reference_forward(x_nchw, params):
    w1, b1, w2, b2, w3, b3, wl, bl = params
    h = jnp.transpose(x_nchw, (0, 2, 3, 1))  # NHWC
    for wgt, bias in ((w1, b1), (w2, b2), (w3, b3)):
        h = jax.lax.conv_general_dilated(
            h, wgt, window_strides=(1, 1), padding='SAME',
            dimension_numbers=('NHWC', 'HWIO', 'NHWC'))
        h = jax.nn.relu(h + bias.reshape(1, 1, 1, -1))
    feat = h.reshape(x_nchw.shape[0], H * W)
    logits = feat @ wl.T + bl                 # torch Linear: x @ W.T + b
    return jax.nn.softmax(logits, axis=1)


def init_params(key):
    ks = jax.random.split(key, 8)
    w1 = jax.random.normal(ks[0], (3, 3, CIN, C1), jnp.float32) * 0.3    # HWIO
    b1 = jax.random.normal(ks[1], (C1,), jnp.float32) * 0.1
    w2 = jax.random.normal(ks[2], (3, 3, C1, C2), jnp.float32) * 0.15
    b2 = jax.random.normal(ks[3], (C2,), jnp.float32) * 0.1
    w3 = jax.random.normal(ks[4], (3, 3, C2, C3), jnp.float32) * 0.15
    b3 = jax.random.normal(ks[5], (C3,), jnp.float32) * 0.1
    wl = jax.random.normal(ks[6], (ACTIONS, ACTIONS), jnp.float32) * 0.2  # (out, in)
    bl = jax.random.normal(ks[7], (ACTIONS,), jnp.float32) * 0.1
    return (w1, b1, w2, b2, w3, b3, wl, bl)


# TODO(synk): train_step / optimizer / loss and the action-selection helpers
# (rollout_action, best_action, get_action, debug, save/load) are host-side
# control logic with no Pallas equivalent; only the forward pass is a kernel.

if __name__ == "__main__":
    key = jax.random.PRNGKey(0)
    kx, kp = jax.random.split(key)
    params = init_params(kp)
    params_buf = prepare_params(params)          # one-time static packing

    # Small batch consistent with the module.
    x = jax.random.normal(kx, (B, CIN, H, W), jnp.float32)   # NCHW, like PyTorch
    out = jax.block_until_ready(on_policy_forward(x, params_buf))
    ref = jax.block_until_ready(reference_forward(x, params))
    assert out.shape == (B, ACTIONS)
    np.testing.assert_allclose(np.asarray(out), np.asarray(ref), rtol=1e-3, atol=1e-4)
    np.testing.assert_allclose(np.asarray(out).sum(axis=1), np.ones(B), rtol=1e-4, atol=1e-4)

    # Also exercise the multi-tile (batched rollout) grid path.
    x_big = jax.random.normal(jax.random.PRNGKey(1), (7, CIN, H, W), jnp.float32)
    out_big = jax.block_until_ready(on_policy_forward(x_big, params_buf))
    ref_big = jax.block_until_ready(reference_forward(x_big, params))
    np.testing.assert_allclose(np.asarray(out_big), np.asarray(ref_big), rtol=1e-3, atol=1e-4)

    print("KERNEL_OK")
</pallas_src>

<mosaic_0001>
module attributes {stable_mosaic.version = 11 : i64} {
  func.func @forward_kernel(%arg0: i32, %arg1: memref<1x8x128xf32, #tpu.memory_space<vmem>>, %arg2: memref<608x128xf32, #tpu.memory_space<vmem>>, %arg3: memref<1x8x128xf32, #tpu.memory_space<vmem>>) attributes {dimension_semantics = [#tpu.dimension_semantics<parallel>], iteration_bounds = array<i64: 1>, scalar_prefetch = 0 : i64, scratch_operands = 0 : i64, tpu.core_type = #tpu.core_type<tc>, window_params = [{transform_indices = @transform_0, window_bounds = array<i64: 1, 8, 128>}, {pipeline_mode = #tpu.pipeline_mode<synchronous>, transform_indices = @transform_1, window_bounds = array<i64: 608, 128>}, {transform_indices = @transform_2, window_bounds = array<i64: 1, 8, 128>}]} {
    %0 = tpu.iota {dimensions = array<i32: 1>} : vector<1x128xi32>
    %c0_i32 = arith.constant 0 : i32
    %1 = vector.broadcast %c0_i32 : i32 to vector<1x128xi32>
    %c36_i32 = arith.constant 36 : i32
    %2 = vector.broadcast %c36_i32 : i32 to vector<1x128xi32>
    %3 = arith.cmpi sge, %0, %2 : vector<1x128xi32>
    %4 = arith.extui %3 : vector<1x128xi1> to vector<1x128xi32>
    %5 = arith.addi %1, %4 : vector<1x128xi32>
    %c72_i32 = arith.constant 72 : i32
    %6 = vector.broadcast %c72_i32 : i32 to vector<1x128xi32>
    %7 = arith.cmpi sge, %0, %6 : vector<1x128xi32>
    %8 = arith.extui %7 : vector<1x128xi1> to vector<1x128xi32>
    %9 = arith.addi %5, %8 : vector<1x128xi32>
    %c108_i32 = arith.constant 108 : i32
    %10 = vector.broadcast %c108_i32 : i32 to vector<1x128xi32>
    %11 = arith.cmpi sge, %0, %10 : vector<1x128xi32>
    %12 = arith.extui %11 : vector<1x128xi1> to vector<1x128xi32>
    %13 = arith.addi %9, %12 : vector<1x128xi32>
    %c36_i32_0 = arith.constant 36 : i32
    %14 = vector.broadcast %c36_i32_0 : i32 to vector<1x128xi32>
    %15 = arith.muli %13, %14 : vector<1x128xi32>
    %16 = arith.subi %0, %15 : vector<1x128xi32>
    %c0_i32_1 = arith.constant 0 : i32
    %17 = vector.broadcast %c0_i32_1 : i32 to vector<1x128xi32>
    %c6_i32 = arith.constant 6 : i32
    %18 = vector.broadcast %c6_i32 : i32 to vector<1x128xi32>
    %19 = arith.cmpi sge, %16, %18 : vector<1x128xi32>
    %20 = arith.extui %19 : vector<1x128xi1> to vector<1x128xi32>
    %21 = arith.addi %17, %20 : vector<1x128xi32>
    %c12_i32 = arith.constant 12 : i32
    %22 = vector.broadcast %c12_i32 : i32 to vector<1x128xi32>
    %23 = arith.cmpi sge, %16, %22 : vector<1x128xi32>
    %24 = arith.extui %23 : vector<1x128xi1> to vector<1x128xi32>
    %25 = arith.addi %21, %24 : vector<1x128xi32>
    %c18_i32 = arith.constant 18 : i32
    %26 = vector.broadcast %c18_i32 : i32 to vector<1x128xi32>
    %27 = arith.cmpi sge, %16, %26 : vector<1x128xi32>
    %28 = arith.extui %27 : vector<1x128xi1> to vector<1x128xi32>
    %29 = arith.addi %25, %28 : vector<1x128xi32>
    %c24_i32 = arith.constant 24 : i32
    %30 = vector.broadcast %c24_i32 : i32 to vector<1x128xi32>
    %31 = arith.cmpi sge, %16, %30 : vector<1x128xi32>
    %32 = arith.extui %31 : vector<1x128xi1> to vector<1x128xi32>
    %33 = arith.addi %29, %32 : vector<1x128xi32>
    %c30_i32 = arith.constant 30 : i32
    %34 = vector.broadcast %c30_i32 : i32 to vector<1x128xi32>
    %35 = arith.cmpi sge, %16, %34 : vector<1x128xi32>
    %36 = arith.extui %35 : vector<1x128xi1> to vector<1x128xi32>
    %37 = arith.addi %33, %36 : vector<1x128xi32>
    %c6_i32_2 = arith.constant 6 : i32
    %38 = vector.broadcast %c6_i32_2 : i32 to vector<1x128xi32>
    %39 = arith.muli %37, %38 : vector<1x128xi32>
    %40 = arith.subi %16, %39 : vector<1x128xi32>
    %c3_i32 = arith.constant 3 : i32
    %41 = vector.broadcast %c3_i32 : i32 to vector<1x128xi32>
    %42 = arith.cmpi slt, %13, %41 : vector<1x128xi32>
    %c1_i32 = arith.constant 1 : i32
    %43 = vector.broadcast %c1_i32 : i32 to vector<1x128xi32>
    %44 = arith.cmpi sge, %37, %43 : vector<1x128xi32>
    %45 = arith.andi %42, %44 : vector<1x128xi1>
    %c4_i32 = arith.constant 4 : i32
    %46 = vector.broadcast %c4_i32 : i32 to vector<1x128xi32>
    %47 = arith.cmpi sle, %37, %46 : vector<1x128xi32>
    %48 = arith.andi %45, %47 : vector<1x128xi1>
    %c1_i32_3 = arith.constant 1 : i32
    %49 = vector.broadcast %c1_i32_3 : i32 to vector<1x128xi32>
    %50 = arith.cmpi sge, %40, %49 : vector<1x128xi32>
    %51 = arith.andi %48, %50 : vector<1x128xi1>
    %c4_i32_4 = arith.constant 4 : i32
    %52 = vector.broadcast %c4_i32_4 : i32 to vector<1x128xi32>
    %53 = arith.cmpi sle, %40, %52 : vector<1x128xi32>
    %54 = arith.andi %51, %53 : vector<1x128xi1>
    %55 = arith.extui %54 : vector<1x128xi1> to vector<1x128xi32>
    %56 = arith.sitofp %55 : vector<1x128xi32> to vector<1x128xf32>
    %c0 = arith.constant 0 : index
    %c0_5 = arith.constant 0 : index
    %c0_6 = arith.constant 0 : index
    %57 = vector.load %arg1[%c0, %c0_5, %c0_6] : memref<1x8x128xf32, #tpu.memory_space<vmem>>, vector<1x8x128xf32>
    %58 = vector.shape_cast %57 : vector<1x8x128xf32> to vector<8x128xf32>
    %c0_7 = arith.constant 0 : index
    %c0_8 = arith.constant 0 : index
    %59 = vector.load %arg2[%c0_7, %c0_8] : memref<608x128xf32, #tpu.memory_space<vmem>>, vector<216x8xf32>
    %c504 = arith.constant 504 : index
    %c0_9 = arith.constant 0 : index
    %60 = vector.load %arg2[%c504, %c0_9] : memref<608x128xf32, #tpu.memory_space<vmem>>, vector<24x1xf32>
    %cst = arith.constant dense<0.000000e+00> : vector<216x128xf32>
    %61 = tpu.matmul %59, %58, %cst {dimension_numbers = #tpu.dot_dimension_numbers<[1], [0], [0], [1], [0, 0, 1, 1], [], []>} : vector<216x8xf32>, vector<8x128xf32>, vector<216x128xf32> -> vector<216x128xf32>
    %62 = vector.extract_strided_slice %61 {offsets = [0, 0], sizes = [24, 128], strides = [1, 1]} : vector<216x128xf32> to vector<24x128xf32>
    %c7_i32 = arith.constant 7 : i32
    %63 = tpu.dynamic_rotate %62 by %c7_i32 dim 1 : vector<24x128xf32>, i32 -> vector<24x128xf32>
    %64 = vector.extract_strided_slice %61 {offsets = [24, 0], sizes = [24, 128], strides = [1, 1]} : vector<216x128xf32> to vector<24x128xf32>
    %c6_i32_10 = arith.constant 6 : i32
    %65 = tpu.dynamic_rotate %64 by %c6_i32_10 dim 1 : vector<24x128xf32>, i32 -> vector<24x128xf32>
    %66 = arith.addf %63, %65 : vector<24x128xf32>
    %67 = vector.extract_strided_slice %61 {offsets = [48, 0], sizes = [24, 128], strides = [1, 1]} : vector<216x128xf32> to vector<24x128xf32>
    %c5_i32 = arith.constant 5 : i32
    %68 = tpu.dynamic_rotate %67 by %c5_i32 dim 1 : vector<24x128xf32>, i32 -> vector<24x128xf32>
    %69 = arith.addf %66, %68 : vector<24x128xf32>
    %70 = vector.extract_strided_slice %61 {offsets = [72, 0], sizes = [24, 128], strides = [1, 1]} : vector<216x128xf32> to vector<24x128xf32>
    %c1_i32_11 = arith.constant 1 : i32
    %71 = tpu.dynamic_rotate %70 by %c1_i32_11 dim 1 : vector<24x128xf32>, i32 -> vector<24x128xf32>
    %72 = arith.addf %69, %71 : vector<24x128xf32>
    %73 = vector.extract_strided_slice %61 {offsets = [96, 0], sizes = [24, 128], strides = [1, 1]} : vector<216x128xf32> to vector<24x128xf32>
    %74 = arith.addf %72, %73 : vector<24x128xf32>
    %75 = vector.extract_strided_slice %61 {offsets = [120, 0], sizes = [24, 128], strides = [1, 1]} : vector<216x128xf32> to vector<24x128xf32>
    %c127_i32 = arith.constant 127 : i32
    %76 = tpu.dynamic_rotate %75 by %c127_i32 dim 1 : vector<24x128xf32>, i32 -> vector<24x128xf32>
    %77 = arith.addf %74, %76 : vector<24x128xf32>
    %78 = vector.extract_strided_slice %61 {offsets = [144, 0], sizes = [24, 128], strides = [1, 1]} : vector<216x128xf32> to vector<24x128xf32>
    %c123_i32 = arith.constant 123 : i32
    %79 = tpu.dynamic_rotate %78 by %c123_i32 dim 1 : vector<24x128xf32>, i32 -> vector<24x128xf32>
    %80 = arith.addf %77, %79 : vector<24x128xf32>
    %81 = vector.extract_strided_slice %61 {offsets = [168, 0], sizes = [24, 128], strides = [1, 1]} : vector<216x128xf32> to vector<24x128xf32>
    %c122_i32 = arith.constant 122 : i32
    %82 = tpu.dynamic_rotate %81 by %c122_i32 dim 1 : vector<24x128xf32>, i32 -> vector<24x128xf32>
    %83 = arith.addf %80, %82 : vector<24x128xf32>
    %84 = vector.extract_strided_slice %61 {offsets = [192, 0], sizes = [24, 128], strides = [1, 1]} : vector<216x128xf32> to vector<24x128xf32>
    %c121_i32 = arith.constant 121 : i32
    %85 = tpu.dynamic_rotate %84 by %c121_i32 dim 1 : vector<24x128xf32>, i32 -> vector<24x128xf32>
    %86 = arith.addf %83, %85 : vector<24x128xf32>
    %87 = vector.broadcast %60 : vector<24x1xf32> to vector<24x128xf32>
    %88 = arith.addf %86, %87 : vector<24x128xf32>
    %cst_12 = arith.constant 0.000000e+00 : f32
    %89 = vector.broadcast %cst_12 : f32 to vector<24x128xf32>
    %90 = arith.maximumf %88, %89 : vector<24x128xf32>
    %91 = vector.broadcast %56 : vector<1x128xf32> to vector<24x128xf32>
    %92 = arith.mulf %90, %91 : vector<24x128xf32>
    %c216 = arith.constant 216 : index
    %c0_13 = arith.constant 0 : index
    %93 = vector.load %arg2[%c216, %c0_13] : memref<608x128xf32, #tpu.memory_space<vmem>>, vector<216x24xf32>
    %c528 = arith.constant 528 : index
    %c0_14 = arith.constant 0 : index
    %94 = vector.load %arg2[%c528, %c0_14] : memref<608x128xf32, #tpu.memory_space<vmem>>, vector<24x1xf32>
    %cst_15 = arith.constant dense<0.000000e+00> : vector<216x128xf32>
    %95 = tpu.matmul %93, %92, %cst_15 {dimension_numbers = #tpu.dot_dimension_numbers<[1], [0], [0], [1], [0, 0, 1, 1], [], []>} : vector<216x24xf32>, vector<24x128xf32>, vector<216x128xf32> -> vector<216x128xf32>
    %96 = vector.extract_strided_slice %95 {offsets = [0, 0], sizes = [24, 128], strides = [1, 1]} : vector<216x128xf32> to vector<24x128xf32>
    %c7_i32_16 = arith.constant 7 : i32
    %97 = tpu.dynamic_rotate %96 by %c7_i32_16 dim 1 : vector<24x128xf32>, i32 -> vector<24x128xf32>
    %98 = vector.extract_strided_slice %95 {offsets = [24, 0], sizes = [24, 128], strides = [1, 1]} : vector<216x128xf32> to vector<24x128xf32>
    %c6_i32_17 = arith.constant 6 : i32
    %99 = tpu.dynamic_rotate %98 by %c6_i32_17 dim 1 : vector<24x128xf32>, i32 -> vector<24x128xf32>
    %100 = arith.addf %97, %99 : vector<24x128xf32>
    %101 = vector.extract_strided_slice %95 {offsets = [48, 0], sizes = [24, 128], strides = [1, 1]} : vector<216x128xf32> to vector<24x128xf32>
    %c5_i32_18 = arith.constant 5 : i32
    %102 = tpu.dynamic_rotate %101 by %c5_i32_18 dim 1 : vector<24x128xf32>, i32 -> vector<24x128xf32>
    %103 = arith.addf %100, %102 : vector<24x128xf32>
    %104 = vector.extract_strided_slice %95 {offsets = [72, 0], sizes = [24, 128], strides = [1, 1]} : vector<216x128xf32> to vector<24x128xf32>
    %c1_i32_19 = arith.constant 1 : i32
    %105 = tpu.dynamic_rotate %104 by %c1_i32_19 dim 1 : vector<24x128xf32>, i32 -> vector<24x128xf32>
    %106 = arith.addf %103, %105 : vector<24x128xf32>
    %107 = vector.extract_strided_slice %95 {offsets = [96, 0], sizes = [24, 128], strides = [1, 1]} : vector<216x128xf32> to vector<24x128xf32>
    %108 = arith.addf %106, %107 : vector<24x128xf32>
    %109 = vector.extract_strided_slice %95 {offsets = [120, 0], sizes = [24, 128], strides = [1, 1]} : vector<216x128xf32> to vector<24x128xf32>
    %c127_i32_20 = arith.constant 127 : i32
    %110 = tpu.dynamic_rotate %109 by %c127_i32_20 dim 1 : vector<24x128xf32>, i32 -> vector<24x128xf32>
    %111 = arith.addf %108, %110 : vector<24x128xf32>
    %112 = vector.extract_strided_slice %95 {offsets = [144, 0], sizes = [24, 128], strides = [1, 1]} : vector<216x128xf32> to vector<24x128xf32>
    %c123_i32_21 = arith.constant 123 : i32
    %113 = tpu.dynamic_rotate %112 by %c123_i32_21 dim 1 : vector<24x128xf32>, i32 -> vector<24x128xf32>
    %114 = arith.addf %111, %113 : vector<24x128xf32>
    %115 = vector.extract_strided_slice %95 {offsets = [168, 0], sizes = [24, 128], strides = [1, 1]} : vector<216x128xf32> to vector<24x128xf32>
    %c122_i32_22 = arith.constant 122 : i32
    %116 = tpu.dynamic_rotate %115 by %c122_i32_22 dim 1 : vector<24x128xf32>, i32 -> vector<24x128xf32>
    %117 = arith.addf %114, %116 : vector<24x128xf32>
    %118 = vector.extract_strided_slice %95 {offsets = [192, 0], sizes = [24, 128], strides = [1, 1]} : vector<216x128xf32> to vector<24x128xf32>
    %c121_i32_23 = arith.constant 121 : i32
    %119 = tpu.dynamic_rotate %118 by %c121_i32_23 dim 1 : vector<24x128xf32>, i32 -> vector<24x128xf32>
    %120 = arith.addf %117, %119 : vector<24x128xf32>
    %121 = vector.broadcast %94 : vector<24x1xf32> to vector<24x128xf32>
    %122 = arith.addf %120, %121 : vector<24x128xf32>
    %cst_24 = arith.constant 0.000000e+00 : f32
    %123 = vector.broadcast %cst_24 : f32 to vector<24x128xf32>
    %124 = arith.maximumf %122, %123 : vector<24x128xf32>
    %125 = vector.broadcast %56 : vector<1x128xf32> to vector<24x128xf32>
    %126 = arith.mulf %124, %125 : vector<24x128xf32>
    %c432 = arith.constant 432 : index
    %c0_25 = arith.constant 0 : index
    %127 = vector.load %arg2[%c432, %c0_25] : memref<608x128xf32, #tpu.memory_space<vmem>>, vector<72x24xf32>
    %c552 = arith.constant 552 : index
    %c0_26 = arith.constant 0 : index
    %128 = vector.load %arg2[%c552, %c0_26] : memref<608x128xf32, #tpu.memory_space<vmem>>, vector<8x1xf32>
    %cst_27 = arith.constant dense<0.000000e+00> : vector<72x128xf32>
    %129 = tpu.matmul %127, %126, %cst_27 {dimension_numbers = #tpu.dot_dimension_numbers<[1], [0], [0], [1], [0, 0, 1, 1], [], []>} : vector<72x24xf32>, vector<24x128xf32>, vector<72x128xf32> -> vector<72x128xf32>
    %130 = vector.extract_strided_slice %129 {offsets = [0, 0], sizes = [8, 128], strides = [1, 1]} : vector<72x128xf32> to vector<8x128xf32>
    %c7_i32_28 = arith.constant 7 : i32
    %131 = tpu.dynamic_rotate %130 by %c7_i32_28 dim 1 : vector<8x128xf32>, i32 -> vector<8x128xf32>
    %132 = vector.extract_strided_slice %129 {offsets = [8, 0], sizes = [8, 128], strides = [1, 1]} : vector<72x128xf32> to vector<8x128xf32>
    %c6_i32_29 = arith.constant 6 : i32
    %133 = tpu.dynamic_rotate %132 by %c6_i32_29 dim 1 : vector<8x128xf32>, i32 -> vector<8x128xf32>
    %134 = arith.addf %131, %133 : vector<8x128xf32>
    %135 = vector.extract_strided_slice %129 {offsets = [16, 0], sizes = [8, 128], strides = [1, 1]} : vector<72x128xf32> to vector<8x128xf32>
    %c5_i32_30 = arith.constant 5 : i32
    %136 = tpu.dynamic_rotate %135 by %c5_i32_30 dim 1 : vector<8x128xf32>, i32 -> vector<8x128xf32>
    %137 = arith.addf %134, %136 : vector<8x128xf32>
    %138 = vector.extract_strided_slice %129 {offsets = [24, 0], sizes = [8, 128], strides = [1, 1]} : vector<72x128xf32> to vector<8x128xf32>
    %c1_i32_31 = arith.constant 1 : i32
    %139 = tpu.dynamic_rotate %138 by %c1_i32_31 dim 1 : vector<8x128xf32>, i32 -> vector<8x128xf32>
    %140 = arith.addf %137, %139 : vector<8x128xf32>
    %141 = vector.extract_strided_slice %129 {offsets = [32, 0], sizes = [8, 128], strides = [1, 1]} : vector<72x128xf32> to vector<8x128xf32>
    %142 = arith.addf %140, %141 : vector<8x128xf32>
    %143 = vector.extract_strided_slice %129 {offsets = [40, 0], sizes = [8, 128], strides = [1, 1]} : vector<72x128xf32> to vector<8x128xf32>
    %c127_i32_32 = arith.constant 127 : i32
    %144 = tpu.dynamic_rotate %143 by %c127_i32_32 dim 1 : vector<8x128xf32>, i32 -> vector<8x128xf32>
    %145 = arith.addf %142, %144 : vector<8x128xf32>
    %146 = vector.extract_strided_slice %129 {offsets = [48, 0], sizes = [8, 128], strides = [1, 1]} : vector<72x128xf32> to vector<8x128xf32>
    %c123_i32_33 = arith.constant 123 : i32
    %147 = tpu.dynamic_rotate %146 by %c123_i32_33 dim 1 : vector<8x128xf32>, i32 -> vector<8x128xf32>
    %148 = arith.addf %145, %147 : vector<8x128xf32>
    %149 = vector.extract_strided_slice %129 {offsets = [56, 0], sizes = [8, 128], strides = [1, 1]} : vector<72x128xf32> to vector<8x128xf32>
    %c122_i32_34 = arith.constant 122 : i32
    %150 = tpu.dynamic_rotate %149 by %c122_i32_34 dim 1 : vector<8x128xf32>, i32 -> vector<8x128xf32>
    %151 = arith.addf %148, %150 : vector<8x128xf32>
    %152 = vector.extract_strided_slice %129 {offsets = [64, 0], sizes = [8, 128], strides = [1, 1]} : vector<72x128xf32> to vector<8x128xf32>
    %c121_i32_35 = arith.constant 121 : i32
    %153 = tpu.dynamic_rotate %152 by %c121_i32_35 dim 1 : vector<8x128xf32>, i32 -> vector<8x128xf32>
    %154 = arith.addf %151, %153 : vector<8x128xf32>
    %155 = vector.broadcast %128 : vector<8x1xf32> to vector<8x128xf32>
    %156 = arith.addf %154, %155 : vector<8x128xf32>
    %cst_36 = arith.constant 0.000000e+00 : f32
    %157 = vector.broadcast %cst_36 : f32 to vector<8x128xf32>
    %158 = arith.maximumf %156, %157 : vector<8x128xf32>
    %c560 = arith.constant 560 : index
    %c0_37 = arith.constant 0 : index
    %159 = vector.load %arg2[%c560, %c0_37] : memref<608x128xf32, #tpu.memory_space<vmem>>, vector<36x16xf32>
    %c600 = arith.constant 600 : index
    %c0_38 = arith.constant 0 : index
    %160 = vector.load %arg2[%c600, %c0_38] : memref<608x128xf32, #tpu.memory_space<vmem>>, vector<1x16xf32>
    %161 = vector.extract_strided_slice %158 {offsets = [0, 0], sizes = [1, 128], strides = [1, 1]} : vector<8x128xf32> to vector<1x128xf32>
    %162 = vector.extract_strided_slice %161 {offsets = [0, 0], sizes = [1, 36], strides = [1, 1]} : vector<1x128xf32> to vector<1x36xf32>
    %163 = vector.extract_strided_slice %161 {offsets = [0, 36], sizes = [1, 36], strides = [1, 1]} : vector<1x128xf32> to vector<1x36xf32>
    %164 = vector.extract_strided_slice %161 {offsets = [0, 72], sizes = [1, 36], strides = [1, 1]} : vector<1x128xf32> to vector<1x36xf32>
    %165 = tpu.concatenate %162, %163, %164 in 0 : vector<1x36xf32>, vector<1x36xf32>, vector<1x36xf32> -> vector<3x36xf32>
    %cst_39 = arith.constant dense<0.000000e+00> : vector<3x16xf32>
    %166 = tpu.matmul %165, %159, %cst_39 {dimension_numbers = #tpu.dot_dimension_numbers<[1], [0], [0], [1], [0, 0, 1, 1], [], []>} : vector<3x36xf32>, vector<36x16xf32>, vector<3x16xf32> -> vector<3x16xf32>
    %167 = vector.broadcast %160 : vector<1x16xf32> to vector<3x16xf32>
    %168 = arith.addf %166, %167 : vector<3x16xf32>
    %cst_40 = arith.constant dense<0xFF800000> : vector<3xf32>
    %169 = vector.multi_reduction <maximumf>, %168, %cst_40 [1] : vector<3x16xf32> to vector<3xf32>
    %170 = vector.shape_cast %169 : vector<3xf32> to vector<3x1xf32>
    %171 = vector.broadcast %170 : vector<3x1xf32> to vector<3x16xf32>
    %172 = arith.subf %168, %171 : vector<3x16xf32>
    %173 = math.exp %172 : vector<3x16xf32>
    %cst_41 = arith.constant dense<0.000000e+00> : vector<3xf32>
    %174 = vector.multi_reduction <add>, %173, %cst_41 [1] : vector<3x16xf32> to vector<3xf32>
    %175 = vector.shape_cast %174 : vector<3xf32> to vector<3x1xf32>
    %176 = tpu.reciprocal %175 : vector<3x1xf32> -> vector<3x1xf32>
    %177 = vector.broadcast %176 : vector<3x1xf32> to vector<3x16xf32>
    %178 = arith.mulf %173, %177 : vector<3x16xf32>
    %cst_42 = arith.constant 0.000000e+00 : f32
    %179 = vector.broadcast %cst_42 : f32 to vector<3x112xf32>
    %180 = tpu.concatenate %178, %179 in 1 : vector<3x16xf32>, vector<3x112xf32> -> vector<3x128xf32>
    %cst_43 = arith.constant 0.000000e+00 : f32
    %181 = vector.broadcast %cst_43 : f32 to vector<5x128xf32>
    %182 = tpu.concatenate %180, %181 in 0 : vector<3x128xf32>, vector<5x128xf32> -> vector<8x128xf32>
    %c0_44 = arith.constant 0 : index
    %c0_45 = arith.constant 0 : index
    %c0_46 = arith.constant 0 : index
    %183 = vector.load %arg3[%c0_44, %c0_45, %c0_46] : memref<1x8x128xf32, #tpu.memory_space<vmem>>, vector<1x8x128xf32>
    %184 = vector.shape_cast %183 : vector<1x8x128xf32> to vector<8x128xf32>
    %185 = vector.shape_cast %182 : vector<8x128xf32> to vector<1x8x128xf32>
    tpu.vector_store %arg3[%c0_44, %c0_45, %c0_46], %185 {strides = array<i32>} : memref<1x8x128xf32, #tpu.memory_space<vmem>>, vector<1x8x128xf32>,
    return
  }
  func.func @transform_0(%arg0: i32) -> (i32, i32, i32) {
    %c0_i32 = arith.constant 0 : i32
    %c0_i32_0 = arith.constant 0 : i32
    %c0_i32_1 = arith.constant 0 : i32
    return %arg0, %c0_i32, %c0_i32_0 : i32, i32, i32
  }
  func.func @transform_1(%arg0: i32) -> (i32, i32) {
    %c0_i32 = arith.constant 0 : i32
    %c0_i32_0 = arith.constant 0 : i32
    %c0_i32_1 = arith.constant 0 : i32
    return %c0_i32, %c0_i32_0 : i32, i32
  }
  func.func @transform_2(%arg0: i32) -> (i32, i32, i32) {
    %c0_i32 = arith.constant 0 : i32
    %c0_i32_0 = arith.constant 0 : i32
    %c0_i32_1 = arith.constant 0 : i32
    return %arg0, %c0_i32, %c0_i32_0 : i32, i32, i32
  }
}

</mosaic_0001>

<bundles_post_ra>
// kernel: on_policy_forward.1
= control target key start
LH: loop header
LB: loop body
LE: loop exit
PB: predicated region body
PF: predicated region fallthrough
CT: control target
= control target key end

     0   :  { %7 = vsyncpa [#allocation3], 0  ;;  %s1602_s9 = smov [#allocation2]   ;;  %s1960_s0 = inlined_call_operand.vmem [shape: f32[1,8,128], index: 0, kind: input, shape index: {}]   ;;  %s1961_s1 = inlined_call_operand.hbm [shape: f32[608,128], index: 1, kind: input, shape index: {}]   ;;  %s1962_s2 = inlined_call_operand.vmem [shape: f32[1,8,128], index: 2, kind: output, shape index: {}]  }
   0x1   :  { %s15_s10 = sshll.u32 %s1602_s9, 4  ;;  %s1578_s13 = scalar_lea.hbm %s1961_s1, 9728  ;;  %s16_s10 = int_to_ptr.vmem [resolvable:$true] %s15_s10 }
   0x2   :  { %p1579_p0 = scmp.ne.s32.totalorder %s1961_s1, %s1578_s13  ;;  %p1582_p1 = scmp.lt.u32.totalorder %s1578_s13, %s1961_s1 }
   0x4   :  { %p1584_p2 = pnand %p1582_p1, %p1579_p0 }
   0x6   :  { %1587 = shalt.err (!%p1584_p2)
}
   0x7   :  { %s1588_s18 = scalar_lea.vmem %s16_s10, 9728  ;;  %p1593_p4 = scmp.lt.s32.totalorder %s16_s10, %s16_s10 }
   0x8   :  { %p1589_p3 = scmp.ne.s32.totalorder %s16_s10, %s1588_s18  ;;  %p1594_p5 = scmp.lt.s32.totalorder %s1588_s18, %s1588_s18 }
   0xa   :  { %p1595_p6 = por %p1594_p5, %p1593_p4 }
   0xc   :  { %p1596_p7 = pnand %p1595_p6, %p1589_p3 }
   0xe   :  { %1599 = shalt.err (!%p1596_p7)
}
   0xf   :  { %s1603_s19 = smov 128   ;;  %s1604_s20 = smov 8  }
  0x10   :  { %21 = dma.hbm_to_vmem [thread:$0]  %s1961_s1, 9728, %s16_s10, [#allocation3], %s1603_s19, %s1603_s19, %s1604_s20  }
  0x11   :  { %1600 = dma.done.wait [#allocation3], 9728  }
  0x12   :  { %1601 = vsyncadd [#allocation3], 4294957568  ;;  %v1605_v0 = vmov 0.0   ;;  %vm1606_vm0 = vmmov 0   ;;  %v1607_v1 = vmov 0   ;;  %vm95_vm1 = vcmask 64512  }
  0x13   :  { %1325 = vmatprep.subr.mxu0 %v1605_v0  ;;  %1553 = vmatprep.subr.mxu1 %v1605_v0  ;;  %v64_v2 = vld [vmem:[%s1960_s0] sm:$0xff]  ;;  %v88_v4 = vld [vmem:[#allocation2 + $0xb8] sm:$0xff]  ;;  %v66_v5 = vld [vmem:[#allocation2 + $0x8] sm:$0xff]  ;;  %s1608_s0 = smov 7   ;;  %s1609_s24 = smov 121  }
  0x14   :  { %1327 = vmatprep.mubr.msk.f32.mxu0 %vm1606_vm0, %v1605_v0  ;;  %1396 = vmatprep.mubr.msk.f32.mxu1 %vm1606_vm0, %v1605_v0  ;;  %v65_v3 = vld [vmem:[#allocation2] sm:$0xff]  ;;  %v67_v7 = vld [vmem:[#allocation2 + $0x10] sm:$0xff]  ;;  %v90_v8 = vld [vmem:[#allocation2 + $0xc8] sm:$0xff]  ;;  %s1610_s25 = smov 6   ;;  %s1611_s26 = smov 5  }
  0x15   :  { %1573 = vset.pattern.permute.xlu0 %v1607_v1  ;;  %1572 = vset.pattern.permute.xlu1 %v1607_v1  ;;  %v89_v6 = vld [vmem:[#allocation2 + $0xc0] sm:$0xff]  ;;  %v92_v10 = vld [vmem:[#allocation2 + $0x1f8] sm:$0xff]  ;;  %v91_v12 = vld [vmem:[#allocation2 + $0xd0] sm:$0xff]  ;;  %s1612_s27 = smov 1   ;;  %s1613_s28 = smov 127  }
  0x16   :  { %1326 = vmatpush3.msra.mxu0 %v64_v2  ;;  %1554 = vmatpush3.msra.mxu1 %v64_v2  ;;  %v93_v9 = vld [vmem:[#allocation2 + $0x200] sm:$0xff]  ;;  %v68_v11 = vld [vmem:[#allocation2 + $0x18] sm:$0xff]  ;;  %v70_v14 = vld [vmem:[#allocation2 + $0x28] sm:$0xff]  ;;  %s1614_s29 = smov 123   ;;  %s1615_s30 = smov 122  }
  0x17   :  { %1328 = vmatmul.mubr.msk.f32.vlgmr.msra.gmra.mrb[0].mxu0 %vm95_vm1, %v65_v3  ;;  %1397 = vmatmul.mubr.msk.f32.vlgmr.msra.gmra.mrb[0].mxu1 %vm95_vm1, %v88_v4  ;;  %v69_v13 = vld [vmem:[#allocation2 + $0x20] sm:$0xff]  ;;  %v71_v15 = vld [vmem:[#allocation2 + $0x30] sm:$0xff]  ;;  %v72_v16 = vld [vmem:[#allocation2 + $0x38] sm:$0xff]  ;;  %s1617_s3 = smov 56   ;;  %s1618_s4 = smov 92  }
  0x18   :  { %1330 = vmatprep.mubr.msk.f32.mxu0 %vm1606_vm0, %v1605_v0  ;;  %1399 = vmatprep.mubr.msk.f32.mxu1 %vm1606_vm0, %v1605_v0  ;;  %v73_v17 = vld [vmem:[#allocation2 + $0x40] sm:$0xff]  ;;  %v74_v18 = vld [vmem:[#allocation2 + $0x48] sm:$0xff]  ;;  %v75_v19 = vld [vmem:[#allocation2 + $0x50] sm:$0xff] }
  0x19   :  { %456 = vperm.xlu0 %1573, %v93_v9   ;;  %451 = vperm.xlu1 %1572, %v92_v10   ;;  %v76_v20 = vld [vmem:[#allocation2 + $0x58] sm:$0xff]  ;;  %v77_v21 = vld [vmem:[#allocation2 + $0x60] sm:$0xff]  ;;  %v78_v22 = vld [vmem:[#allocation2 + $0x68] sm:$0xff] }
  0x1a   :  { %v79_v23 = vld [vmem:[#allocation2 + $0x70] sm:$0xff]  ;;  %v80_v24 = vld [vmem:[#allocation2 + $0x78] sm:$0xff]  ;;  %v81_v25 = vld [vmem:[#allocation2 + $0x80] sm:$0xff] }
  0x1b   :  { %1331 = vmatmul.mubr.msk.f32.gmra.mrb[2].mxu0 %vm95_vm1, %v66_v5  ;;  %1400 = vmatmul.mubr.msk.f32.gmra.mrb[2].mxu1 %vm95_vm1, %v89_v6  ;;  %v82_v26 = vld [vmem:[#allocation2 + $0x88] sm:$0xff]  ;;  %v83_v27 = vld [vmem:[#allocation2 + $0x90] sm:$0xff]  ;;  %v84_v28 = vld [vmem:[#allocation2 + $0x98] sm:$0xff] }
  0x1c   :  { %1333 = vmatprep.mubr.msk.f32.mxu0 %vm1606_vm0, %v1605_v0  ;;  %1402 = vmatprep.mubr.msk.f32.mxu1 %vm1606_vm0, %v1605_v0  ;;  %v85_v29 = vld [vmem:[#allocation2 + $0xa0] sm:$0xff]  ;;  %v86_v30 = vld [vmem:[#allocation2 + $0xa8] sm:$0xff]  ;;  %v87_v31 = vld [vmem:[#allocation2 + $0xb0] sm:$0xff] }
  0x1f   :  { %1334 = vmatmul.mubr.msk.f32.gmra.mrb[4].mxu0 %vm95_vm1, %v67_v7  ;;  %1403 = vmatmul.mubr.msk.f32.gmra.mrb[4].mxu1 %vm95_vm1, %v90_v8 }
  0x20   :  { %1336 = vmatprep.mubr.msk.f32.mxu0 %vm1606_vm0, %v1605_v0  ;;  %1405 = vmatprep.mubr.msk.f32.mxu1 %vm1606_vm0, %v1605_v0 }
  0x23   :  { %1337 = vmatmul.mubr.msk.f32.gmra.mrb[6].mxu0 %vm95_vm1, %v68_v11  ;;  %1406 = vmatmul.mubr.msk.f32.gmra.mrb[6].mxu1 %vm95_vm1, %v91_v12 }
  0x24   :  { %1339 = vmatprep.mubr.msk.f32.mxu0 %vm1606_vm0, %v1605_v0  ;;  %1414 = vmatprep.mubr.msk.f32.mxu1 %vm1606_vm0, %v1605_v0 }
  0x27   :  { %1340 = vmatmul.mubr.msk.f32.gmra.mrb[8].mxu0 %vm95_vm1, %v69_v13 }
  0x28   :  { %1342 = vmatprep.mubr.msk.f32.mxu0 %vm1606_vm0, %v1605_v0 }
  0x2b   :  { %1343 = vmatmul.mubr.msk.f32.gmra.mrb[10].mxu0 %vm95_vm1, %v70_v14 }
  0x2c   :  { %1345 = vmatprep.mubr.msk.f32.mxu0 %vm1606_vm0, %v1605_v0 }
  0x2f   :  { %1346 = vmatmul.mubr.msk.f32.gmra.mrb[12].mxu0 %vm95_vm1, %v71_v15 }
  0x30   :  { %1348 = vmatprep.mubr.msk.f32.mxu0 %vm1606_vm0, %v1605_v0 }
  0x33   :  { %1349 = vmatmul.mubr.msk.f32.gmra.mrb[14].mxu0 %vm95_vm1, %v72_v16 }
  0x34   :  { %1351 = vmatprep.mubr.msk.f32.mxu0 %vm1606_vm0, %v1605_v0 }
  0x37   :  { %1352 = vmatmul.mubr.msk.f32.gmra.mrb[16].mxu0 %vm95_vm1, %v73_v17 }
  0x38   :  { %1354 = vmatprep.mubr.msk.f32.mxu0 %vm1606_vm0, %v1605_v0 }
  0x3b   :  { %1355 = vmatmul.mubr.msk.f32.gmra.mrb[18].mxu0 %vm95_vm1, %v74_v18 }
  0x3c   :  { %1357 = vmatprep.mubr.msk.f32.mxu0 %vm1606_vm0, %v1605_v0 }
  0x3f   :  { %1358 = vmatmul.mubr.msk.f32.gmra.mrb[20].mxu0 %vm95_vm1, %v75_v19 }
  0x40   :  { %1360 = vmatprep.mubr.msk.f32.mxu0 %vm1606_vm0, %v1605_v0 }
  0x43   :  { %1361 = vmatmul.mubr.msk.f32.gmra.mrb[22].mxu0 %vm95_vm1, %v76_v20 }
  0x44   :  { %1363 = vmatprep.mubr.msk.f32.mxu0 %vm1606_vm0, %v1605_v0 }
  0x47   :  { %1364 = vmatmul.mubr.msk.f32.gmra.mrb[24].mxu0 %vm95_vm1, %v77_v21 }
  0x48   :  { %1366 = vmatprep.mubr.msk.f32.mxu0 %vm1606_vm0, %v1605_v0 }
  0x4b   :  { %1367 = vmatmul.mubr.msk.f32.gmra.mrb[26].mxu0 %vm95_vm1, %v78_v22  ;;  %v1616_v22 = vmov 0.0|0.0  }
  0x4c   :  { %1369 = vmatprep.mubr.msk.f32.mxu0 %vm1606_vm0, %v1605_v0  ;;  %1541 = vmatprep.subr.bf16.mxu1 %v1616_v22 }
  0x4d   :  { %1544 = vmatprep.subr.bf16.mxu0 %v1616_v22 }
  0x4f   :  { %1370 = vmatmul.mubr.msk.f32.gmra.mrb[28].mxu0 %vm95_vm1, %v79_v23 }
  0x50   :  { %1372 = vmatprep.mubr.msk.f32.mxu0 %vm1606_vm0, %v1605_v0 }
  0x53   :  { %1373 = vmatmul.mubr.msk.f32.gmra.mrb[30].mxu0 %vm95_vm1, %v80_v24 }
  0x54   :  { %1375 = vmatprep.mubr.msk.f32.mxu0 %vm1606_vm0, %v1605_v0 }
  0x57   :  { %1376 = vmatmul.mubr.msk.f32.gmra.mrb[32].mxu0 %vm95_vm1, %v81_v25  ;;  %v94_v25 = vld [vmem:[#allocation2 + $0x208] sm:$0xff] }
  0x58   :  { %1378 = vmatprep.mubr.msk.f32.mxu0 %vm1606_vm0, %v1605_v0 }
  0x5b   :  { %1379 = vmatmul.mubr.msk.f32.gmra.mrb[34].mxu0 %vm95_vm1, %v82_v26  ;;  %v500_v26 = vld [vmem:[#allocation2 + $0x210] sm:$0xff] }
  0x5c   :  { %1381 = vmatprep.mubr.msk.f32.mxu0 %vm1606_vm0, %v1605_v0 }
  0x5f   :  { %1382 = vmatmul.mubr.msk.f32.gmra.mrb[36].mxu0 %vm95_vm1, %v83_v27  ;;  %v502_v27 = vld [vmem:[#allocation2 + $0x220] sm:$0xff] }
  0x60   :  { %1384 = vmatprep.mubr.msk.f32.mxu0 %vm1606_vm0, %v1605_v0 }
  0x63   :  { %1385 = vmatmul.mubr.msk.f32.gmra.mrb[38].mxu0 %vm95_vm1, %v84_v28  ;;  %v501_v28 = vld [vmem:[#allocation2 + $0x218] sm:$0xff] }
  0x64   :  { %1387 = vmatprep.mubr.msk.f32.mxu0 %vm1606_vm0, %v1605_v0 }
  0x67   :  { %1388 = vmatmul.mubr.msk.f32.gmra.mrb[40].mxu0 %vm95_vm1, %v85_v29  ;;  %v25_v29 = vlaneseq }
  0x68   :  { %1390 = vmatprep.mubr.msk.f32.mxu0 %vm1606_vm0, %v1605_v0 }
  0x6b   :  { %1391 = vmatmul.mubr.msk.f32.gmra.mrb[42].mxu0 %vm95_vm1, %v86_v30 }
  0x6c   :  { %1393 = vmatprep.mubr.msk.f32.mxu0 %vm1606_vm0, %v1605_v0 }
  0x6f   :  { %1394 = vmatmul.mubr.msk.f32.gmra.mrb[44].mxu0 %vm95_vm1, %v87_v31  ;;  %v26_v31 = vand.u32 127, %v25_v29 }
  0x70   :  { %1501 = vmatprep.mubr.msk.f32.mxu0 %vm1606_vm0, %v1605_v0 }
  0x71   :  { %vm27_vm2 = vcmp.ge.s32.totalorder %v26_v31, 36  ;;  %vm29_vm3 = vcmp.ge.s32.totalorder %v26_v31, 72  ;;  %vm32_vm4 = vcmp.ge.s32.totalorder %v26_v31, 108 }
  0x98   :  { %v1776_v30 = vpop.permute.xlu1 %451 }
  0xea   :  { %v243_v32 = vpop.f32.mrb[0].mxu0  ;;  %v1738_v33 = vpop.f32.mrb[0].mxu1 }
  0xeb   :  { %377 = vrot.lane.b32.xlu0 %v243_v32, %s1608_s0  ;;  %v1329_v34 = vpop.f32.mrb[1].mxu0  ;;  %v1398_v35 = vpop.f32.mrb[1].mxu1 }
  0xec   :  { %v1778_v32 = vpop.permute.xlu0 %456  ;;  %v28_v35 = vsel %vm27_vm2, 1, %v1607_v1 }
  0xee   :  { %v248_v36 = vpop.f32.mrb[2].mxu0  ;;  %v363_v37 = vpop.f32.mrb[2].mxu1 }
  0xef   :  { %379 = vrot.lane.b32.xlu0 %v248_v36, %s1608_s0  ;;  %v1332_v38 = vpop.f32.mrb[3].mxu0  ;;  %v1401_v39 = vpop.f32.mrb[3].mxu1  ;;  %v30_v36 = vsel %vm29_vm3, 1, %v1607_v1 }
  0xf0   :  { %v33_v39 = vsel %vm32_vm4, 1, %v1607_v1  ;;  %vm503_vm4 = vcmask 195584  }
  0xf2   :  { %v253_v40 = vpop.f32.mrb[4].mxu0  ;;  %v368_v41 = vpop.f32.mrb[4].mxu1 }
  0xf3   :  { %442 = vrot.lane.b32.xlu1 %v368_v41, %s1609_s24  ;;  %440 = vrot.lane.b32.xlu0 %v363_v37, %s1609_s24  ;;  %v1335_v42 = vpop.f32.mrb[5].mxu0  ;;  %v1404_v43 = vpop.f32.mrb[5].mxu1 }
  0xf6   :  { %v258_v44 = vpop.f32.mrb[6].mxu0  ;;  %v1744_v45 = vpop.f32.mrb[6].mxu1 }
  0xf7   :  { %381 = vrot.lane.b32.xlu0 %v253_v40, %s1608_s0  ;;  %383 = vrot.lane.b32.xlu1 %v258_v44, %s1610_s25  ;;  %v1338_v46 = vpop.f32.mrb[7].mxu0  ;;  %v1407_v47 = vpop.f32.mrb[7].mxu1 }
  0xfa   :  { %v263_v48 = vpop.f32.mrb[8].mxu0 }
  0xfb   :  { %385 = vrot.lane.b32.xlu1 %v263_v48, %s1610_s25  ;;  %v1341_v49 = vpop.f32.mrb[9].mxu0 }
  0xfe   :  { %v268_v50 = vpop.f32.mrb[10].mxu0 }
  0xff   :  { %387 = vrot.lane.b32.xlu1 %v268_v50, %s1610_s25  ;;  %v1344_v51 = vpop.f32.mrb[11].mxu0 }
 0x102   :  { %v273_v52 = vpop.f32.mrb[12].mxu0 }
 0x103   :  { %392 = vrot.lane.b32.xlu0 %v273_v52, %s1611_s26  ;;  %v1347_v53 = vpop.f32.mrb[13].mxu0 }
 0x106   :  { %v278_v54 = vpop.f32.mrb[14].mxu0 }
 0x107   :  { %394 = vrot.lane.b32.xlu1 %v278_v54, %s1611_s26  ;;  %v1350_v55 = vpop.f32.mrb[15].mxu0 }
 0x10a   :  { %v283_v56 = vpop.f32.mrb[16].mxu0 }
 0x10b   :  { %396 = vrot.lane.b32.xlu0 %v283_v56, %s1611_s26  ;;  %v1353_v57 = vpop.f32.mrb[17].mxu0 }
 0x10e   :  { %v288_v58 = vpop.f32.mrb[18].mxu0 }
 0x10f   :  { %401 = vrot.lane.b32.xlu0 %v288_v58, %s1612_s27  ;;  %v1356_v59 = vpop.f32.mrb[19].mxu0 }
 0x112   :  { %v293_v60 = vpop.f32.mrb[20].mxu0 }
 0x113   :  { %403 = vrot.lane.b32.xlu1 %v293_v60, %s1612_s27  ;;  %v1359_v61 = vpop.f32.mrb[21].mxu0 }
 0x116   :  { %v298_v62 = vpop.f32.mrb[22].mxu0 }
 0x117   :  { %405 = vrot.lane.b32.xlu1 %v298_v62, %s1612_s27  ;;  %v1362_v63 = vpop.f32.mrb[23].mxu0 }
 0x11a   :  { %v1756_v2 = vpop.f32.mrb[24].mxu0 }
 0x11b   :  { %v1365_v3 = vpop.f32.mrb[25].mxu0 }
 0x11e   :  { %v1758_v4 = vpop.f32.mrb[26].mxu0 }
 0x11f   :  { %v1368_v5 = vpop.f32.mrb[27].mxu0 }
 0x122   :  { %v1760_v6 = vpop.f32.mrb[28].mxu0 }
 0x123   :  { %v1371_v7 = vpop.f32.mrb[29].mxu0 }
 0x126   :  { %v318_v8 = vpop.f32.mrb[30].mxu0 }
 0x127   :  { %413 = vrot.lane.b32.xlu1 %v318_v8, %s1613_s28  ;;  %v1374_v9 = vpop.f32.mrb[31].mxu0 }
 0x12a   :  { %v323_v10 = vpop.f32.mrb[32].mxu0 }
 0x12b   :  { %415 = vrot.lane.b32.xlu0 %v323_v10, %s1613_s28  ;;  %v1377_v11 = vpop.f32.mrb[33].mxu0 }
 0x12e   :  { %v328_v12 = vpop.f32.mrb[34].mxu0 }
 0x12f   :  { %417 = vrot.lane.b32.xlu1 %v328_v12, %s1613_s28  ;;  %v1380_v13 = vpop.f32.mrb[35].mxu0 }
 0x132   :  { %v333_v14 = vpop.f32.mrb[36].mxu0 }
 0x133   :  { %422 = vrot.lane.b32.xlu1 %v333_v14, %s1614_s29  ;;  %v1383_v15 = vpop.f32.mrb[37].mxu0 }
 0x136   :  { %v338_v16 = vpop.f32.mrb[38].mxu0 }
 0x137   :  { %424 = vrot.lane.b32.xlu0 %v338_v16, %s1614_s29  ;;  %v1386_v17 = vpop.f32.mrb[39].mxu0 }
 0x13a   :  { %v343_v18 = vpop.f32.mrb[40].mxu0 }
 0x13b   :  { %v1389_v19 = vpop.f32.mrb[41].mxu0 }
 0x13e   :  { %v348_v20 = vpop.f32.mrb[42].mxu0 }
 0x13f   :  { %431 = vrot.lane.b32.xlu1 %v348_v20, %s1615_s30  ;;  %v1392_v21 = vpop.f32.mrb[43].mxu0 }
 0x142   :  { %v353_v23 = vpop.f32.mrb[44].mxu0 }
 0x143   :  { %426 = vrot.lane.b32.xlu1 %v343_v18, %s1614_s29  ;;  %433 = vrot.lane.b32.xlu0 %v353_v23, %s1615_s30  ;;  %v1395_v24 = vpop.f32.mrb[45].mxu0 }
 0x147   :  { %444 = vrot.lane.b32.xlu1 %v1744_v45, %s1609_s24  ;;  %461 = vperm.xlu0 %1573, %v94_v25  }
 0x14b   :  { %859 = vperm.xlu1 %1572, %v500_v26   ;;  %435 = vrot.lane.b32.xlu0 %v1738_v33, %s1615_s30  ;;  %v31_v33 = vadd.s32 %v30_v36, %v28_v35 }
 0x14d   :  { %v34_v40 = vadd.s32 %v33_v39, %v31_v33 }
 0x14f   :  { %869 = vperm.xlu1 %1572, %v502_v27   ;;  %864 = vperm.xlu0 %1573, %v501_v28   ;;  %v35_v43 = vmul.u32 36, %v34_v40  ;;  %vm53_vm10 = vcmp.lt.s32.totalorder %v34_v40, 3 }
 0x151   :  { %v36_v44 = vsub.s32 %v26_v31, %v35_v43 }
 0x153   :  { %vm37_vm5 = vcmp.ge.s32.totalorder %v36_v44, 6  ;;  %vm39_vm6 = vcmp.ge.s32.totalorder %v36_v44, 12  ;;  %vm42_vm7 = vcmp.ge.s32.totalorder %v36_v44, 18  ;;  %vm45_vm8 = vcmp.ge.s32.totalorder %v36_v44, 24 }
 0x154   :  { %v38_v49 = vsel %vm37_vm5, 1, %v1607_v1  ;;  %v40_v50 = vsel %vm39_vm6, 1, %v1607_v1  ;;  %v43_v54 = vsel %vm42_vm7, 1, %v1607_v1  ;;  %v46_v58 = vsel %vm45_vm8, 1, %v1607_v1 }
 0x155   :  { %v41_v52 = vadd.s32 %v40_v50, %v38_v49  ;;  %vm48_vm9 = vcmp.ge.s32.totalorder %v36_v44, 30  ;;  %v473_v50 = vld [vmem:[#allocation2 + $0xd8] sm:$0xff]  ;;  %vm1074_vm5 = vcmask 1040384   ;;  %vm1076_vm6 = vcmask 1041408  }
 0x156   :  { %v49_v61 = vsel %vm48_vm9, 1, %v1607_v1  ;;  %vm1082_vm7 = vcmask 293888   ;;  %vm1160_vm8 = vcmask 124928   ;;  %vm1172_vm9 = vcmask 130048  }
 0x157   :  { %v44_v55 = vadd.s32 %v43_v54, %v41_v52  ;;  %v476_v52 = vld [vmem:[#allocation2 + $0xf0] sm:$0xff]  ;;  %v478_v54 = vld [vmem:[#allocation2 + $0x100] sm:$0xff] }
 0x159   :  { %v47_v59 = vadd.s32 %v46_v58, %v44_v55  ;;  %v479_v55 = vld [vmem:[#allocation2 + $0x108] sm:$0xff]  ;;  %v482_v58 = vld [vmem:[#allocation2 + $0x120] sm:$0xff] }
 0x15b   :  { %v50_v5 = vadd.s32 %v49_v61, %v47_v59  ;;  %v483_v59 = vld [vmem:[#allocation2 + $0x128] sm:$0xff]  ;;  %v485_v61 = vld [vmem:[#allocation2 + $0x138] sm:$0xff] }
 0x15d   :  { %v378_v37 = vpop.permute.xlu0 %377  ;;  %v51_v11 = vmul.u32 6, %v50_v5  ;;  %vm54_vm11 = vcmp.ge.s32.totalorder %v50_v5, 1  ;;  %vm56_vm13 = vcmp.le.s32.totalorder %v50_v5, 4  ;;  %v489_v5 = vld [vmem:[#allocation2 + $0x158] sm:$0xff] }
 0x15e   :  { %vm55_vm12 = vmand %vm53_vm10, %vm54_vm11  ;;  %vm1174_vm10 = vcmask 1042432  }
 0x15f   :  { %v52_v17 = vsub.s32 %v36_v44, %v51_v11  ;;  %vm57_vm14 = vmand %vm55_vm12, %vm56_vm13  ;;  %v494_v11 = vld [vmem:[#allocation2 + $0x180] sm:$0xff] }
 0x161   :  { %v380_v41 = vpop.permute.xlu0 %379  ;;  %vm58_vm15 = vcmp.ge.s32.totalorder %v52_v17, 1  ;;  %vm60_vm2 = vcmp.le.s32.totalorder %v52_v17, 4 }
 0x162   :  { %vm59_vm1 = vmand %vm57_vm14, %vm58_vm15 }
 0x163   :  { %vm61_vm3 = vmand %vm59_vm1, %vm60_vm2 }
 0x164   :  { %v1796_v31 = vsel %vm61_vm3, 1.0, %v1605_v0 }
 0x165   :  { %v1780_v34 = vpop.permute.xlu1 %442  ;;  %v441_v45 = vpop.permute.xlu0 %440 }
 0x169   :  { %v384_v38 = vpop.permute.xlu1 %383  ;;  %v382_v48 = vpop.permute.xlu0 %381 }
 0x16a   :  { %v389_v62 = vadd.f32 %v384_v38, %v378_v37 }
 0x16d   :  { %v386_v42 = vpop.permute.xlu1 %385 }
 0x16e   :  { %v390_v8 = vadd.f32 %v386_v42, %v380_v41 }
 0x171   :  { %v388_v46 = vpop.permute.xlu1 %387 }
 0x172   :  { %v391_v36 = vadd.f32 %v388_v46, %v382_v48 }
 0x175   :  { %v393_v53 = vpop.permute.xlu0 %392 }
 0x176   :  { %v398_v3 = vadd.f32 %v393_v53, %v389_v62  ;;  %v477_v53 = vld [vmem:[#allocation2 + $0xf8] sm:$0xff]  ;;  %v486_v62 = vld [vmem:[#allocation2 + $0x140] sm:$0xff] }
 0x179   :  { %v395_v47 = vpop.permute.xlu1 %394 }
 0x17a   :  { %v399_v10 = vadd.f32 %v395_v47, %v390_v8  ;;  %v491_v8 = vld [vmem:[#allocation2 + $0x168] sm:$0xff] }
 0x17d   :  { %v397_v56 = vpop.permute.xlu0 %396 }
 0x17e   :  { %v400_v38 = vadd.f32 %v397_v56, %v391_v36  ;;  %v480_v56 = vld [vmem:[#allocation2 + $0x110] sm:$0xff] }
 0x181   :  { %v402_v63 = vpop.permute.xlu0 %401 }
 0x182   :  { %v407_v9 = vadd.f32 %v402_v63, %v398_v3  ;;  %v487_v63 = vld [vmem:[#allocation2 + $0x148] sm:$0xff]  ;;  %v488_v3 = vld [vmem:[#allocation2 + $0x150] sm:$0xff] }
 0x184   :  { %v410_v13 = vadd.f32 %v407_v9, %v1756_v2  ;;  %v492_v9 = vld [vmem:[#allocation2 + $0x170] sm:$0xff] }
 0x185   :  { %v404_v51 = vpop.permute.xlu1 %403 }
 0x186   :  { %v408_v12 = vadd.f32 %v404_v51, %v399_v10  ;;  %v475_v51 = vld [vmem:[#allocation2 + $0xe8] sm:$0xff]  ;;  %v493_v10 = vld [vmem:[#allocation2 + $0x178] sm:$0xff] }
 0x188   :  { %v411_v1 = vadd.f32 %v408_v12, %v1758_v4  ;;  %v495_v12 = vld [vmem:[#allocation2 + $0x188] sm:$0xff] }
 0x189   :  { %v406_v57 = vpop.permute.xlu1 %405 }
 0x18a   :  { %v409_v40 = vadd.f32 %v406_v57, %v400_v38  ;;  %v481_v57 = vld [vmem:[#allocation2 + $0x118] sm:$0xff] }
 0x199   :  { %v414_v60 = vpop.permute.xlu1 %413 }
 0x19a   :  { %v419_v16 = vadd.f32 %v414_v60, %v410_v13  ;;  %v484_v60 = vld [vmem:[#allocation2 + $0x130] sm:$0xff] }
 0x19b   :  { %v496_v13 = vld [vmem:[#allocation2 + $0x190] sm:$0xff] }
 0x19d   :  { %v416_v14 = vpop.permute.xlu0 %415 }
 0x19e   :  { %v420_v21 = vadd.f32 %v416_v14, %v411_v1  ;;  %v497_v14 = vld [vmem:[#allocation2 + $0x198] sm:$0xff] }
 0x1a1   :  { %v418_v7 = vpop.permute.xlu1 %417 }
 0x1a5   :  { %v423_v15 = vpop.permute.xlu1 %422 }
 0x1a6   :  { %v428_v18 = vadd.f32 %v423_v15, %v419_v16  ;;  %v498_v15 = vld [vmem:[#allocation2 + $0x1a0] sm:$0xff]  ;;  %v499_v16 = vld [vmem:[#allocation2 + $0x1a8] sm:$0xff] }
 0x1a9   :  { %v425_v19 = vpop.permute.xlu0 %424 }
 0x1aa   :  { %v429_v24 = vadd.f32 %v425_v19, %v420_v21 }
 0x1b1   :  { %v432_v20 = vpop.permute.xlu1 %431 }
 0x1b2   :  { %v437_v23 = vadd.f32 %v432_v20, %v428_v18 }
 0x1b4   :  { %v446_v25 = vadd.f32 %v441_v45, %v437_v23 }
 0x1b5   :  { %v434_v2 = vpop.permute.xlu0 %433 }
 0x1b6   :  { %v464_v26 = vadd.f32 %v1776_v30, %v446_v25  ;;  %v438_v27 = vadd.f32 %v434_v2, %v429_v24  ;;  %v412_v30 = vadd.f32 %v409_v40, %v1760_v6  ;;  %v474_v6 = vld [vmem:[#allocation2 + $0xe0] sm:$0xff] }
 0x1b8   :  { %v447_v28 = vadd.f32 %v1780_v34, %v438_v27  ;;  %v467_v29 = vmax.f32 %v464_v26, 0.0  ;;  %v427_v34 = vpop.permute.xlu1 %426 }
 0x1ba   :  { %v465_v4 = vadd.f32 %v1778_v32, %v447_v28  ;;  %v470_v33 = vmul.f32 %v1796_v31, %v467_v29  ;;  %v421_v32 = vadd.f32 %v418_v7, %v412_v30  ;;  %v490_v7 = vld [vmem:[#allocation2 + $0x160] sm:$0xff] }
 0x1bc   :  { %v468_v35 = vmax.f32 %v465_v4, 0.0  ;;  %v430_v42 = vadd.f32 %v427_v34, %v421_v32  ;;  %v445_v45 = vpop.permute.xlu1 %444 }
 0x1be   :  { %v471_v37 = vmul.f32 %v1796_v31, %v468_v35 }
 0x1c0   :  { %v1542_v39 = vpack.c.bf16 %v471_v37, %v470_v33 }
 0x1c2   :  { %1543 = vmatpush3.bf16.msra.mxu1 %v1542_v39 }
 0x1c3   :  { %1412 = vmatprep.subr.mxu1 %v1605_v0 }
 0x1c6   :  { %v462_v41 = vpop.permute.xlu0 %461 }
 0x1ca   :  { %v436_v43 = vpop.permute.xlu0 %435 }
 0x1cb   :  { %v439_v44 = vadd.f32 %v436_v43, %v430_v42 }
 0x1cd   :  { %v448_v46 = vadd.f32 %v445_v45, %v439_v44 }
 0x1cf   :  { %v466_v47 = vadd.f32 %v462_v41, %v448_v46 }
 0x1d1   :  { %v469_v48 = vmax.f32 %v466_v47, 0.0 }
 0x1d3   :  { %v472_v49 = vmul.f32 %v1796_v31, %v469_v48 }
 0x1d5   :  { %1413 = vmatpush3.msra.mxu1 %v472_v49 }
 0x1d6   :  { %1415 = vmatmul.mubr.msk.f32.vlgmr.msra.gmra.mrb[8].mxu1 %vm503_vm4, %v473_v50  ;;  %1547 = vmatprep.subr.bf16.mxu1 %v1616_v22 }
 0x1d7   :  { %1417 = vmatprep.mubr.msk.f32.mxu1 %vm1606_vm0, %v1605_v0 }
 0x1da   :  { %1418 = vmatmul.mubr.msk.f32.gmra.mrb[10].mxu1 %vm503_vm4, %v474_v6 }
 0x1db   :  { %1420 = vmatprep.mubr.msk.f32.mxu1 %vm1606_vm0, %v1605_v0 }
 0x1de   :  { %1421 = vmatmul.mubr.msk.f32.gmra.mrb[12].mxu1 %vm503_vm4, %v475_v51 }
 0x1df   :  { %1423 = vmatprep.mubr.msk.f32.mxu1 %vm1606_vm0, %v1605_v0 }
 0x1e2   :  { %1424 = vmatmul.mubr.msk.f32.gmra.mrb[14].mxu1 %vm503_vm4, %v476_v52 }
 0x1e3   :  { %1426 = vmatprep.mubr.msk.f32.mxu1 %vm1606_vm0, %v1605_v0 }
 0x1e6   :  { %1427 = vmatmul.mubr.msk.f32.gmra.mrb[16].mxu1 %vm503_vm4, %v477_v53 }
 0x1e7   :  { %1429 = vmatprep.mubr.msk.f32.mxu1 %vm1606_vm0, %v1605_v0 }
 0x1ea   :  { %1430 = vmatmul.mubr.msk.f32.gmra.mrb[18].mxu1 %vm503_vm4, %v478_v54 }
 0x1eb   :  { %1432 = vmatprep.mubr.msk.f32.mxu1 %vm1606_vm0, %v1605_v0 }
 0x1ee   :  { %1433 = vmatmul.mubr.msk.f32.gmra.mrb[20].mxu1 %vm503_vm4, %v479_v55 }
 0x1ef   :  { %1435 = vmatprep.mubr.msk.f32.mxu1 %vm1606_vm0, %v1605_v0 }
 0x1f2   :  { %1436 = vmatmul.mubr.msk.f32.gmra.mrb[22].mxu1 %vm503_vm4, %v480_v56 }
 0x1f3   :  { %1438 = vmatprep.mubr.msk.f32.mxu1 %vm1606_vm0, %v1605_v0 }
 0x1f6   :  { %1439 = vmatmul.mubr.msk.f32.gmra.mrb[24].mxu1 %vm503_vm4, %v481_v57 }
 0x1f7   :  { %1441 = vmatprep.mubr.msk.f32.mxu1 %vm1606_vm0, %v1605_v0 }
 0x1fa   :  { %1442 = vmatmul.mubr.msk.f32.gmra.mrb[26].mxu1 %vm503_vm4, %v482_v58 }
 0x1fb   :  { %1444 = vmatprep.mubr.msk.f32.mxu1 %vm1606_vm0, %v1605_v0 }
 0x1fe   :  { %1445 = vmatmul.mubr.msk.f32.gmra.mrb[28].mxu1 %vm503_vm4, %v483_v59 }
 0x1ff   :  { %1447 = vmatprep.mubr.msk.f32.mxu1 %vm1606_vm0, %v1605_v0 }
 0x202   :  { %1448 = vmatmul.mubr.msk.f32.gmra.mrb[30].mxu1 %vm503_vm4, %v484_v60 }
 0x203   :  { %1450 = vmatprep.mubr.msk.f32.mxu1 %vm1606_vm0, %v1605_v0 }
 0x206   :  { %1451 = vmatmul.mubr.msk.f32.gmra.mrb[32].mxu1 %vm503_vm4, %v485_v61 }
 0x207   :  { %1453 = vmatprep.mubr.msk.f32.mxu1 %vm1606_vm0, %v1605_v0 }
 0x20a   :  { %1454 = vmatmul.mubr.msk.f32.gmra.mrb[34].mxu1 %vm503_vm4, %v486_v62 }
 0x20b   :  { %1456 = vmatprep.mubr.msk.f32.mxu1 %vm1606_vm0, %v1605_v0 }
 0x20e   :  { %1457 = vmatmul.mubr.msk.f32.gmra.mrb[36].mxu1 %vm503_vm4, %v487_v63 }
 0x20f   :  { %1459 = vmatprep.mubr.msk.f32.mxu1 %vm1606_vm0, %v1605_v0 }
 0x212   :  { %1460 = vmatmul.mubr.msk.f32.gmra.mrb[38].mxu1 %vm503_vm4, %v488_v3 }
 0x213   :  { %1462 = vmatprep.mubr.msk.f32.mxu1 %vm1606_vm0, %v1605_v0 }
 0x216   :  { %1463 = vmatmul.mubr.msk.f32.gmra.mrb[40].mxu1 %vm503_vm4, %v489_v5 }
 0x217   :  { %1465 = vmatprep.mubr.msk.f32.mxu1 %vm1606_vm0, %v1605_v0 }
 0x21a   :  { %1466 = vmatmul.mubr.msk.f32.gmra.mrb[42].mxu1 %vm503_vm4, %v490_v7 }
 0x21b   :  { %1468 = vmatprep.mubr.msk.f32.mxu1 %vm1606_vm0, %v1605_v0 }
 0x21e   :  { %1469 = vmatmul.mubr.msk.f32.gmra.mrb[44].mxu1 %vm503_vm4, %v491_v8 }
 0x21f   :  { %1471 = vmatprep.mubr.msk.f32.mxu1 %vm1606_vm0, %v1605_v0 }
 0x222   :  { %1472 = vmatmul.mubr.msk.f32.gmra.mrb[46].mxu1 %vm503_vm4, %v492_v9 }
 0x223   :  { %1474 = vmatprep.mubr.msk.f32.mxu1 %vm1606_vm0, %v1605_v0 }
 0x226   :  { %1475 = vmatmul.mubr.msk.f32.gmra.mrb[48].mxu1 %vm503_vm4, %v493_v10  ;;  %v865_v10 = vpop.permute.xlu0 %864 }
 0x227   :  { %1477 = vmatprep.mubr.msk.f32.mxu1 %vm1606_vm0, %v1605_v0 }
 0x22a   :  { %1478 = vmatmul.mubr.msk.f32.gmra.mrb[50].mxu1 %vm503_vm4, %v494_v11  ;;  %v860_v11 = vpop.permute.xlu1 %859 }
 0x22b   :  { %1480 = vmatprep.mubr.msk.f32.mxu1 %vm1606_vm0, %v1605_v0 }
 0x22e   :  { %1481 = vmatmul.mubr.msk.f32.gmra.mrb[52].mxu1 %vm503_vm4, %v495_v12 }
 0x22f   :  { %1483 = vmatprep.mubr.msk.f32.mxu1 %vm1606_vm0, %v1605_v0 }
 0x232   :  { %1484 = vmatmul.mubr.msk.f32.gmra.mrb[54].mxu1 %vm503_vm4, %v496_v13  ;;  %v870_v13 = vpop.permute.xlu1 %869 }
 0x233   :  { %1486 = vmatprep.mubr.msk.f32.mxu1 %vm1606_vm0, %v1605_v0 }
 0x236   :  { %1487 = vmatmul.mubr.msk.f32.gmra.mrb[56].mxu1 %vm503_vm4, %v497_v14 }
 0x237   :  { %1489 = vmatprep.mubr.msk.f32.mxu1 %vm1606_vm0, %v1605_v0 }
 0x23a   :  { %1490 = vmatmul.mubr.msk.f32.gmra.mrb[58].mxu1 %vm503_vm4, %v498_v15 }
 0x23b   :  { %1492 = vmatprep.mubr.msk.f32.mxu1 %vm1606_vm0, %v1605_v0 }
 0x23e   :  { %1493 = vmatmul.mubr.msk.f32.gmra.mrb[60].mxu1 %vm503_vm4, %v499_v16 }
 0x23f   :  { %1538 = vmatprep.mubr.msk.f32.mxu1 %vm1606_vm0, %v1605_v0 }
 0x2a9   :  { %v651_v17 = vpop.f32.mrb[8].mxu1 }
 0x2aa   :  { %785 = vrot.lane.b32.xlu0 %v651_v17, %s1608_s0  ;;  %v1416_v1 = vpop.f32.mrb[9].mxu1 }
 0x2ad   :  { %v656_v18 = vpop.f32.mrb[10].mxu1 }
 0x2ae   :  { %787 = vrot.lane.b32.xlu1 %v656_v18, %s1608_s0  ;;  %v1419_v19 = vpop.f32.mrb[11].mxu1 }
 0x2b1   :  { %v661_v20 = vpop.f32.mrb[12].mxu1 }
 0x2b2   :  { %789 = vrot.lane.b32.xlu0 %v661_v20, %s1608_s0  ;;  %v1422_v21 = vpop.f32.mrb[13].mxu1 }
 0x2b5   :  { %v666_v23 = vpop.f32.mrb[14].mxu1 }
 0x2b6   :  { %791 = vrot.lane.b32.xlu0 %v666_v23, %s1610_s25  ;;  %v1425_v24 = vpop.f32.mrb[15].mxu1 }
 0x2b9   :  { %v671_v25 = vpop.f32.mrb[16].mxu1 }
 0x2ba   :  { %793 = vrot.lane.b32.xlu1 %v671_v25, %s1610_s25  ;;  %v1428_v2 = vpop.f32.mrb[17].mxu1 }
 0x2bd   :  { %v676_v26 = vpop.f32.mrb[18].mxu1 }
 0x2be   :  { %795 = vrot.lane.b32.xlu1 %v676_v26, %s1610_s25  ;;  %v1431_v27 = vpop.f32.mrb[19].mxu1 }
 0x2c1   :  { %v681_v28 = vpop.f32.mrb[20].mxu1 }
 0x2c2   :  { %800 = vrot.lane.b32.xlu0 %v681_v28, %s1611_s26  ;;  %v1434_v29 = vpop.f32.mrb[21].mxu1 }
 0x2c5   :  { %v686_v4 = vpop.f32.mrb[22].mxu1 }
 0x2c6   :  { %802 = vrot.lane.b32.xlu1 %v686_v4, %s1611_s26  ;;  %v1437_v35 = vpop.f32.mrb[23].mxu1 }
 0x2c9   :  { %v691_v36 = vpop.f32.mrb[24].mxu1 }
 0x2ca   :  { %804 = vrot.lane.b32.xlu0 %v691_v36, %s1611_s26  ;;  %v1440_v33 = vpop.f32.mrb[25].mxu1 }
 0x2cd   :  { %v696_v37 = vpop.f32.mrb[26].mxu1 }
 0x2ce   :  { %809 = vrot.lane.b32.xlu0 %v696_v37, %s1612_s27  ;;  %v1443_v38 = vpop.f32.mrb[27].mxu1 }
 0x2d1   :  { %v701_v39 = vpop.f32.mrb[28].mxu1 }
 0x2d2   :  { %811 = vrot.lane.b32.xlu1 %v701_v39, %s1612_s27  ;;  %v1446_v40 = vpop.f32.mrb[29].mxu1 }
 0x2d5   :  { %v706_v30 = vpop.f32.mrb[30].mxu1 }
 0x2d6   :  { %813 = vrot.lane.b32.xlu1 %v706_v30, %s1612_s27  ;;  %v1449_v34 = vpop.f32.mrb[31].mxu1 }
 0x2d9   :  { %v1897_v41 = vpop.f32.mrb[32].mxu1 }
 0x2da   :  { %v1452_v32 = vpop.f32.mrb[33].mxu1 }
 0x2dd   :  { %v1899_v42 = vpop.f32.mrb[34].mxu1 }
 0x2de   :  { %v1455_v43 = vpop.f32.mrb[35].mxu1 }
 0x2e1   :  { %v1901_v44 = vpop.f32.mrb[36].mxu1 }
 0x2e2   :  { %v1458_v45 = vpop.f32.mrb[37].mxu1 }
 0x2e5   :  { %v726_v46 = vpop.f32.mrb[38].mxu1 }
 0x2e6   :  { %821 = vrot.lane.b32.xlu1 %v726_v46, %s1613_s28  ;;  %v1461_v47 = vpop.f32.mrb[39].mxu1 }
 0x2e9   :  { %v731_v48 = vpop.f32.mrb[40].mxu1 }
 0x2ea   :  { %823 = vrot.lane.b32.xlu0 %v731_v48, %s1613_s28  ;;  %v1464_v49 = vpop.f32.mrb[41].mxu1 }
 0x2ed   :  { %v736_v50 = vpop.f32.mrb[42].mxu1 }
 0x2ee   :  { %825 = vrot.lane.b32.xlu0 %v736_v50, %s1613_s28  ;;  %v1467_v6 = vpop.f32.mrb[43].mxu1 }
 0x2f1   :  { %v741_v51 = vpop.f32.mrb[44].mxu1 }
 0x2f2   :  { %830 = vrot.lane.b32.xlu0 %v741_v51, %s1614_s29  ;;  %v1470_v52 = vpop.f32.mrb[45].mxu1 }
 0x2f5   :  { %v746_v53 = vpop.f32.mrb[46].mxu1 }
 0x2f6   :  { %832 = vrot.lane.b32.xlu1 %v746_v53, %s1614_s29  ;;  %v1473_v54 = vpop.f32.mrb[47].mxu1 }
 0x2f9   :  { %v751_v55 = vpop.f32.mrb[48].mxu1 }
 0x2fa   :  { %v1476_v56 = vpop.f32.mrb[49].mxu1 }
 0x2fd   :  { %v756_v57 = vpop.f32.mrb[50].mxu1 }
 0x2fe   :  { %839 = vrot.lane.b32.xlu0 %v756_v57, %s1615_s30  ;;  %v1479_v58 = vpop.f32.mrb[51].mxu1 }
 0x301   :  { %v761_v59 = vpop.f32.mrb[52].mxu1 }
 0x302   :  { %841 = vrot.lane.b32.xlu1 %v761_v59, %s1615_s30  ;;  %v1482_v60 = vpop.f32.mrb[53].mxu1 }
 0x305   :  { %v766_v61 = vpop.f32.mrb[54].mxu1 }
 0x306   :  { %v1485_v62 = vpop.f32.mrb[55].mxu1 }
 0x309   :  { %v771_v63 = vpop.f32.mrb[56].mxu1 }
 0x30a   :  { %848 = vrot.lane.b32.xlu1 %v771_v63, %s1609_s24  ;;  %v1488_v3 = vpop.f32.mrb[57].mxu1 }
 0x30d   :  { %v776_v5 = vpop.f32.mrb[58].mxu1 }
 0x30e   :  { %843 = vrot.lane.b32.xlu1 %v766_v61, %s1615_s30  ;;  %850 = vrot.lane.b32.xlu0 %v776_v5, %s1609_s24  ;;  %v1491_v7 = vpop.f32.mrb[59].mxu1 }
 0x311   :  { %v781_v8 = vpop.f32.mrb[60].mxu1 }
 0x312   :  { %834 = vrot.lane.b32.xlu0 %v751_v55, %s1614_s29  ;;  %v1494_v9 = vpop.f32.mrb[61].mxu1 }
 0x316   :  { %852 = vrot.lane.b32.xlu0 %v781_v8, %s1609_s24 }
 0x31c   :  { %v786_v12 = vpop.permute.xlu0 %785 }
 0x320   :  { %v788_v15 = vpop.permute.xlu1 %787 }
 0x324   :  { %v790_v14 = vpop.permute.xlu0 %789 }
 0x328   :  { %v792_v16 = vpop.permute.xlu0 %791 }
 0x329   :  { %v797_v2 = vadd.f32 %v792_v16, %v786_v12  ;;  %v883_v12 = vld [vmem:[#allocation2 + $0x1c0] sm:$0xff]  ;;  %v888_v16 = vld [vmem:[#allocation2 + $0x1e8] sm:$0xff] }
 0x32c   :  { %v794_v17 = vpop.permute.xlu1 %793 }
 0x32d   :  { %v798_v29 = vadd.f32 %v794_v17, %v788_v15  ;;  %v887_v15 = vld [vmem:[#allocation2 + $0x1e0] sm:$0xff]  ;;  %v889_v17 = vld [vmem:[#allocation2 + $0x1f0] sm:$0xff] }
 0x330   :  { %v796_v18 = vpop.permute.xlu1 %795 }
 0x331   :  { %v799_v34 = vadd.f32 %v796_v18, %v790_v14  ;;  %v886_v14 = vld [vmem:[#allocation2 + $0x1d8] sm:$0xff] }
 0x334   :  { %v801_v1 = vpop.permute.xlu0 %800 }
 0x335   :  { %v806_v27 = vadd.f32 %v801_v1, %v797_v2  ;;  %v890_v2 = vld [vmem:[#allocation2 + $0x228] sm:$0xff] }
 0x338   :  { %v803_v20 = vpop.permute.xlu1 %802 }
 0x339   :  { %v807_v35 = vadd.f32 %v803_v20, %v798_v29 }
 0x33c   :  { %v805_v19 = vpop.permute.xlu0 %804 }
 0x33d   :  { %v808_v45 = vadd.f32 %v805_v19, %v799_v34  ;;  %v1062_v34 = vld [vmem:[#allocation2 + $0x248] sm:$0xff] }
 0x340   :  { %v810_v21 = vpop.permute.xlu0 %809 }
 0x341   :  { %v815_v4 = vadd.f32 %v810_v21, %v806_v27 }
 0x343   :  { %v818_v38 = vadd.f32 %v815_v4, %v1897_v41 }
 0x344   :  { %v812_v23 = vpop.permute.xlu1 %811 }
 0x345   :  { %v816_v37 = vadd.f32 %v812_v23, %v807_v35 }
 0x347   :  { %v819_v32 = vadd.f32 %v816_v37, %v1899_v42  ;;  %v1059_v37 = vld [vmem:[#allocation2 + $0x230] sm:$0xff] }
 0x348   :  { %v814_v25 = vpop.permute.xlu1 %813 }
 0x349   :  { %v817_v49 = vadd.f32 %v814_v25, %v808_v45 }
 0x34b   :  { %v820_v54 = vadd.f32 %v817_v49, %v1901_v44 }
 0x358   :  { %v822_v28 = vpop.permute.xlu1 %821 }
 0x359   :  { %v827_v39 = vadd.f32 %v822_v28, %v818_v38  ;;  %v1060_v38 = vld [vmem:[#allocation2 + $0x238] sm:$0xff] }
 0x35c   :  { %v824_v24 = vpop.permute.xlu0 %823 }
 0x35d   :  { %v828_v46 = vadd.f32 %v824_v24, %v819_v32 }
 0x360   :  { %v826_v26 = vpop.permute.xlu0 %825 }
 0x361   :  { %v829_v55 = vadd.f32 %v826_v26, %v820_v54 }
 0x364   :  { %v831_v36 = vpop.permute.xlu0 %830 }
 0x365   :  { %v836_v43 = vadd.f32 %v831_v36, %v827_v39  ;;  %v1061_v39 = vld [vmem:[#allocation2 + $0x240] sm:$0xff] }
 0x368   :  { %v833_v33 = vpop.permute.xlu1 %832 }
 0x369   :  { %v837_v50 = vadd.f32 %v833_v33, %v828_v46 }
 0x370   :  { %v840_v40 = vpop.permute.xlu0 %839 }
 0x371   :  { %v845_v47 = vadd.f32 %v840_v40, %v836_v43  ;;  %v1551_v43 = vpack.c.bf16 %v1062_v34, %v1061_v39 }
 0x374   :  { %v842_v30 = vpop.permute.xlu1 %841 }
 0x375   :  { %v846_v51 = vadd.f32 %v842_v30, %v837_v50  ;;  %v1548_v30 = vpack.c.bf16 %v1060_v38, %v1059_v37 }
 0x377   :  { %1549 = vmatpush3.bf16.msra.mxu1 %v1548_v30 }
 0x378   :  { %1550 = vmatprep.subr.bf16.mxu1 %v1616_v22 }
 0x37b   :  { %1552 = vmatpush3.bf16.msra.mxu1 %v1551_v43 }
 0x37c   :  { %v849_v48 = vpop.permute.xlu1 %848  ;;  %1536 = vmatprep.subr.mxu1 %v1605_v0 }
 0x37d   :  { %v854_v6 = vadd.f32 %v849_v48, %v845_v47 }
 0x37f   :  { %v872_v52 = vadd.f32 %v860_v11, %v854_v6  ;;  %v882_v11 = vld [vmem:[#allocation2 + $0x1b8] sm:$0xff] }
 0x380   :  { %v851_v53 = vpop.permute.xlu0 %850  ;;  %v844_v60 = vpop.permute.xlu1 %843 }
 0x381   :  { %v855_v41 = vadd.f32 %v851_v53, %v846_v51  ;;  %v875_v56 = vmax.f32 %v872_v52, 0.0 }
 0x383   :  { %v873_v57 = vadd.f32 %v865_v10, %v855_v41  ;;  %v878_v61 = vmul.f32 %v1796_v31, %v875_v56  ;;  %v881_v10 = vld [vmem:[#allocation2 + $0x1b0] sm:$0xff] }
 0x384   :  { %v835_v58 = vpop.permute.xlu0 %834 }
 0x385   :  { %v876_v59 = vmax.f32 %v873_v57, 0.0  ;;  %v838_v42 = vadd.f32 %v835_v58, %v829_v55  ;;  %v1063_v55 = vld [vmem:[#allocation2 + $0x250] sm:$0xf] }
 0x387   :  { %v879_v62 = vmul.f32 %v1796_v31, %v876_v59  ;;  %v847_v63 = vadd.f32 %v844_v60, %v838_v42 }
 0x388   :  { %v853_v3 = vpop.permute.xlu0 %852 }
 0x389   :  { %v1545_v5 = vpack.c.bf16 %v879_v62, %v878_v61  ;;  %v856_v7 = vadd.f32 %v853_v3, %v847_v63 }
 0x38b   :  { %v874_v8 = vadd.f32 %v870_v13, %v856_v7  ;;  %1546 = vmatpush3.bf16.msra.mxu0 %v1545_v5  ;;  %v885_v13 = vld [vmem:[#allocation2 + $0x1d0] sm:$0xff]  ;;  %v1246_v7 = vld [vmem:[#allocation2 + $0x258] ss:$0 sm:$0xff] }
 0x38c   :  { %1499 = vmatprep.subr.mxu0 %v1605_v0 }
 0x38d   :  { %v877_v44 = vmax.f32 %v874_v8, 0.0 }
 0x38f   :  { %v880_v9 = vmul.f32 %v1796_v31, %v877_v44  ;;  %v884_v31 = vld [vmem:[#allocation2 + $0x1c8] sm:$0xff] }
 0x391   :  { %1500 = vmatpush3.msra.mxu0 %v880_v9 }
 0x392   :  { %1502 = vmatmul.mubr.msk.f32.vlgmr.msra.gmra.mrb[46].mxu0 %vm503_vm4, %v881_v10 }
 0x393   :  { %1504 = vmatprep.mubr.msk.f32.mxu0 %vm1606_vm0, %v1605_v0 }
 0x396   :  { %1505 = vmatmul.mubr.msk.f32.gmra.mrb[48].mxu0 %vm503_vm4, %v882_v11 }
 0x397   :  { %1507 = vmatprep.mubr.msk.f32.mxu0 %vm1606_vm0, %v1605_v0 }
 0x39a   :  { %1508 = vmatmul.mubr.msk.f32.gmra.mrb[50].mxu0 %vm503_vm4, %v883_v12 }
 0x39b   :  { %1510 = vmatprep.mubr.msk.f32.mxu0 %vm1606_vm0, %v1605_v0 }
 0x39e   :  { %1511 = vmatmul.mubr.msk.f32.gmra.mrb[52].mxu0 %vm503_vm4, %v884_v31 }
 0x39f   :  { %1513 = vmatprep.mubr.msk.f32.mxu0 %vm1606_vm0, %v1605_v0 }
 0x3a2   :  { %1514 = vmatmul.mubr.msk.f32.gmra.mrb[54].mxu0 %vm503_vm4, %v885_v13 }
 0x3a3   :  { %1516 = vmatprep.mubr.msk.f32.mxu0 %vm1606_vm0, %v1605_v0 }
 0x3a6   :  { %1517 = vmatmul.mubr.msk.f32.gmra.mrb[56].mxu0 %vm503_vm4, %v886_v14 }
 0x3a7   :  { %1519 = vmatprep.mubr.msk.f32.mxu0 %vm1606_vm0, %v1605_v0 }
 0x3aa   :  { %1520 = vmatmul.mubr.msk.f32.gmra.mrb[58].mxu0 %vm503_vm4, %v887_v15 }
 0x3ab   :  { %1522 = vmatprep.mubr.msk.f32.mxu0 %vm1606_vm0, %v1605_v0 }
 0x3ae   :  { %1523 = vmatmul.mubr.msk.f32.gmra.mrb[60].mxu0 %vm503_vm4, %v888_v16 }
 0x3af   :  { %1525 = vmatprep.mubr.msk.f32.mxu0 %vm1606_vm0, %v1605_v0  ;;  %vm1086_vm0 = vcmask 1043456  }
 0x3b0   :  { %1537 = vmatpush3.msk.msra.mxu1 %vm1086_vm0, %v1063_v55 }
 0x3b2   :  { %1526 = vmatmul.mubr.msk.f32.gmra.mrb[62].mxu0 %vm503_vm4, %v889_v17 }
 0x465   :  { %v984_v1 = vpop.f32.mrb[46].mxu0 }
 0x466   :  { %1028 = vrot.lane.b32.xlu1 %v984_v1, %s1608_s0  ;;  %v1503_v18 = vpop.f32.mrb[47].mxu0 }
 0x469   :  { %v989_v19 = vpop.f32.mrb[48].mxu0 }
 0x46a   :  { %1030 = vrot.lane.b32.xlu0 %v989_v19, %s1610_s25  ;;  %v1506_v20 = vpop.f32.mrb[49].mxu0 }
 0x46d   :  { %v994_v21 = vpop.f32.mrb[50].mxu0 }
 0x46e   :  { %1033 = vrot.lane.b32.xlu1 %v994_v21, %s1611_s26  ;;  %v1509_v23 = vpop.f32.mrb[51].mxu0 }
 0x471   :  { %v999_v24 = vpop.f32.mrb[52].mxu0 }
 0x472   :  { %1036 = vrot.lane.b32.xlu0 %v999_v24, %s1612_s27  ;;  %v1512_v25 = vpop.f32.mrb[53].mxu0 }
 0x475   :  { %v1004_v26 = vpop.f32.mrb[54].mxu0 }
 0x476   :  { %1054 = vperm.xlu0 %1573, %v890_v2   ;;  %v1515_v27 = vpop.f32.mrb[55].mxu0 }
 0x479   :  { %v1009_v28 = vpop.f32.mrb[56].mxu0 }
 0x47a   :  { %1040 = vrot.lane.b32.xlu1 %v1009_v28, %s1613_s28  ;;  %v1518_v29 = vpop.f32.mrb[57].mxu0 }
 0x47d   :  { %v1014_v4 = vpop.f32.mrb[58].mxu0 }
 0x47e   :  { %1043 = vrot.lane.b32.xlu1 %v1014_v4, %s1614_s29  ;;  %v1521_v35 = vpop.f32.mrb[59].mxu0 }
 0x481   :  { %v1019_v36 = vpop.f32.mrb[60].mxu0 }
 0x482   :  { %1046 = vrot.lane.b32.xlu0 %v1019_v36, %s1615_s30  ;;  %v1524_v33 = vpop.f32.mrb[61].mxu0 }
 0x485   :  { %v1024_v40 = vpop.f32.mrb[62].mxu0 }
 0x486   :  { %1049 = vrot.lane.b32.xlu1 %v1024_v40, %s1609_s24  ;;  %v1527_v32 = vpop.f32.mrb[63].mxu0 }
 0x4d8   :  { %v1029_v45 = vpop.permute.xlu1 %1028 }
 0x4dc   :  { %v1031_v46 = vpop.permute.xlu0 %1030 }
 0x4dd   :  { %v1032_v48 = vadd.f32 %v1031_v46, %v1029_v45 }
 0x4e0   :  { %v1034_v47 = vpop.permute.xlu1 %1033 }
 0x4e1   :  { %v1035_v50 = vadd.f32 %v1034_v47, %v1032_v48 }
 0x4e4   :  { %v1037_v49 = vpop.permute.xlu0 %1036 }
 0x4e5   :  { %v1038_v51 = vadd.f32 %v1037_v49, %v1035_v50 }
 0x4e7   :  { %v1039_v52 = vadd.f32 %v1038_v51, %v1004_v26 }
 0x4ec   :  { %v1041_v6 = vpop.permute.xlu1 %1040 }
 0x4ed   :  { %v1042_v41 = vadd.f32 %v1041_v6, %v1039_v52 }
 0x4f0   :  { %v1044_v53 = vpop.permute.xlu1 %1043 }
 0x4f1   :  { %v1045_v56 = vadd.f32 %v1044_v53, %v1042_v41 }
 0x4f5   :  { %v1055_v54 = vpop.permute.xlu0 %1054 }
 0x4f8   :  { %v1050_v57 = vpop.permute.xlu1 %1049 }
 0x4f9   :  { %v1047_v22 = vpop.permute.xlu0 %1046 }
 0x4fa   :  { %v1048_v58 = vadd.f32 %v1047_v22, %v1045_v56 }
 0x4fc   :  { %v1051_v0 = vadd.f32 %v1050_v57, %v1048_v58 }
 0x4fe   :  { %v1057_v59 = vadd.f32 %v1055_v54, %v1051_v0 }
 0x500   :  { %v1058_v42 = vmax.f32 %v1057_v59, 0.0 }
 0x502   :  { %v1070_v60 = vrot.slane %v1058_v42, 6  ;;  %v1066_v61 = vrot.slane %v1058_v42, 7 }
 0x504   :  { %1071 = vrot.lane.b32.xlu1 %v1070_v60, %s1617_s3  ;;  %1067 = vrot.lane.b32.xlu0 %v1066_v61, %s1618_s4 }
 0x576   :  { %v1072_v62 = vpop.permute.xlu1 %1071  ;;  %v1068_v63 = vpop.permute.xlu0 %1067 }
 0x577   :  { %v1075_v3 = vsel %vm1074_vm5, %v1058_v42, %v1068_v63 }
 0x578   :  { %v1077_v5 = vsel %vm1076_vm6, %v1075_v3, %v1072_v62 }
 0x579   :  { %1539 = vmatmul.mubr.msk.f32.vlgmr.msra.gmra.mrb[62].mxu1 %vm1082_vm7, %v1077_v5 }
 0x64c   :  { %v1156_v8 = vpop.f32.mrb[62].mxu1 }
 0x64d   :  { %v1157_v44 = vadd.f32 %v1246_v7, %v1156_v8  ;;  %v1540_v9 = vpop.f32.mrb[63].mxu1 }
 0x64f   :  { %v1161_v10 = vsel %vm1160_vm8, %v1157_v44, -inf }
 0x650   :  { %1162 = vmax.xlane.f32.xlu0 %v1161_v10 }
 0x6dd   :  { %v1163_v11 = vpop.xlane.xlu0 %1162 }
 0x6de   :  { %v1164_v12 = vsub.f32 %v1157_v44, %v1163_v11 }
 0x6e0   :  { %v1165_v31 = vmul.f32 1.442695, %v1164_v12 }
 0x6e2   :  { %1574 = vpow2.f32 %v1165_v31 }
 0x6ec   :  { %v1575_v13 = vpop.eup %1574 }
 0x6ed   :  { %v1167_v14 = vsel %vm1160_vm8, %v1575_v13, 0.0 }
 0x6ee   :  { %1168 = vadd.xlane.f32.xlu1 %v1167_v14 }
 0x77b   :  { %v1169_v15 = vpop.xlane.xlu1 %1168 }
 0x77c   :  { %1576 = vrcp.f32 %v1169_v15 }
 0x786   :  { %v1577_v16 = vpop.eup %1576 }
 0x787   :  { %v1171_v17 = vmul.f32 %v1577_v16, %v1575_v13 }
 0x789   :  { %v1173_v1 = vsel %vm1172_vm9, %v1171_v17, 0.0 }
 0x78a   :  { %v1175_v18 = vsel %vm1174_vm10, %v1173_v1, 0.0 }
 0x78b   :  { %1176 = vst [vmem:[%s1962_s2] sm:$0xff] %v1175_v18 }
 0x78c   :  { %1181 = vsyncpa [#allocation3], 1 }

</bundles_post_ra>
